<compile_context>
chip_gen: v7x
topology: tpu7x:2x2x1
jax: 0.10.0
libtpu: 0.0.40
codegen_flags: <defaults>
</compile_context>

<pallas_src>
import jax
import jax.numpy as jnp
from jax.experimental import pallas as pl
from jax.experimental.pallas import tpu as pltpu

BN_EPS = 1e-5


def _vmem_limit_bytes():
    """Generation-aware scoped-VMEM cap (~3/4 of physical, <=100 MiB)."""
    try:
        cap = int(pltpu.get_tpu_info().vmem_capacity_bytes)
    except Exception:
        cap = 128 * 1024 * 1024
    return min(cap * 3 // 4, 100 * 1024 * 1024)


# ------------------------------ Pallas kernel ------------------------------

def _c2f_fused_kernel(x_ref, wp1_ref, sp1_ref, bp1_ref,
                      w1_ref, s1_ref, b1_ref,
                      w2_ref, s2_ref, b2_ref,
                      wp2_ref, sp2_ref, bp2_ref, o_ref):
    # Shapes (W-folded, lane-dense):
    #   x_ref  : (1, H, W*Cin)            wp1_ref: (W*Cin, 2*W*h)
    #   w1_ref : (depth, W*h, W*Cmid)     w2_ref : (depth, 3*W*Cmid, W*h)
    #   wp2_ref: (2+depth, W*h, W*d_o)    s*/b*  : per-channel affine tiled over W
    #   o_ref  : (1, H, W*d_o)
    H = x_ref.shape[1]
    depth = w1_ref.shape[0]
    wh = w1_ref.shape[1]            # W * h     (branch width, folded)
    wcmid = w1_ref.shape[2]         # W * Cmid
    wdo = o_ref.shape[2]            # W * d_o

    def affine_silu(y, s, b):
        y = y * s + b
        return y * jax.nn.sigmoid(y)                       # folded BN + SiLU

    # --- p1: 1x1 conv + BN + SiLU; both torch.chunk halves come out W-folded.
    x = x_ref[0].astype(jnp.bfloat16)                       # (H, W*Cin)
    y = jnp.dot(x, wp1_ref[...], preferred_element_type=jnp.float32)
    y = affine_silu(y, sp1_ref[...], bp1_ref[...])          # (H, 2*W*h) f32
    xs = [y[:, :wh], y[:, wh:]]                             # torch.chunk(2, dim=1)

    zero_row = jnp.zeros((1, wcmid), jnp.float32)

    # --- depth x Bottleneck, entirely in registers / VMEM.
    for d in range(depth):
        z = xs[-1]                                          # (H, W*h) f32
        t = jnp.dot(z.astype(jnp.bfloat16), w1_ref[d],
                    preferred_element_type=jnp.float32)
        t = affine_silu(t, s1_ref[d], b1_ref[d])            # (H, W*Cmid)
        # 3x3 conv = ONE banded matmul: operand lanes = [row-above | row | row-below];
        # out-of-image rows are zero (this *is* the conv's vertical zero padding).
        up = jnp.concatenate([zero_row, t[:-1]], axis=0)    # up[i] = t[i-1]
        dn = jnp.concatenate([t[1:], zero_row], axis=0)     # dn[i] = t[i+1]
        band = jnp.concatenate([up, t, dn], axis=-1).astype(jnp.bfloat16)
        u = jnp.dot(band, w2_ref[d], preferred_element_type=jnp.float32)
        u = affine_silu(u, s2_ref[d], b2_ref[d])            # (H, W*h)
        xs.append(z + u)                                    # identity residual

    # --- p2: 1x1 conv over the implicit concat = sum of per-branch matmuls.
    acc = jnp.zeros((H, wdo), jnp.float32)
    for b, xb in enumerate(xs):
        acc = acc + jnp.dot(xb.astype(jnp.bfloat16), wp2_ref[b],
                            preferred_element_type=jnp.float32)
    o_ref[0] = affine_silu(acc, sp2_ref[...], bp2_ref[...])


# ---------------------- weight folding (done ONCE, outside jit) ------------

def prepare_c2f_params(params, W):
    """Fold BN + conv weights into the W-folded lane-dense layout (inference constants)."""
    eye = jnp.eye(W, dtype=jnp.float32)

    def fold_w(w):                 # (Cin, Cout) -> block-diagonal (W*Cin, W*Cout)
        return jnp.kron(eye, w)

    def fold_v(v):                 # (C,) -> (1, W*C)
        return jnp.tile(v, W)[None, :].astype(jnp.float32)

    wp1, sp1, bp1 = params["p1"]
    h = wp1.shape[1] // 2
    # TODO(synk): the kron W-folding only pays for tiny channel counts; cut over to
    #             a plain (B*H*W, C) x (C, Cout) layout once C >= ~128.
    wp1f = jnp.concatenate([fold_w(wp1[:, :h]), fold_w(wp1[:, h:])],
                           axis=1).astype(jnp.bfloat16)
    sp1f = jnp.concatenate([fold_v(sp1[:h]), fold_v(sp1[h:])], axis=1)
    bp1f = jnp.concatenate([fold_v(bp1[:h]), fold_v(bp1[h:])], axis=1)

    w1s, s1s, b1s, w2s, s2s, b2s = [], [], [], [], [], []
    for bp in params["bottlenecks"]:
        w1, s1, b1 = bp["conv1"]
        w2, s2, b2 = bp["conv2"]
        w1s.append(fold_w(w1))
        s1s.append(fold_v(s1)); b1s.append(fold_v(b1))
        # 3x3 -> banded; the 3 dy bands stacked along K so the kernel needs only
        # one (H, 3*W*Cmid) x (3*W*Cmid, W*h) matmul per bottleneck.
        bands = [sum(jnp.kron(jnp.eye(W, k=1 - dx, dtype=jnp.float32), w2[dy, dx])
                     for dx in range(3)) for dy in range(3)]
        w2s.append(jnp.concatenate(bands, axis=0))
        s2s.append(fold_v(s2)); b2s.append(fold_v(b2))
    w1s = jnp.stack(w1s).astype(jnp.bfloat16)
    w2s = jnp.stack(w2s).astype(jnp.bfloat16)
    s1s, b1s = jnp.stack(s1s), jnp.stack(b1s)
    s2s, b2s = jnp.stack(s2s), jnp.stack(b2s)

    wp2, sp2, bp2 = params["p2"]
    nb = 2 + len(params["bottlenecks"])
    wp2s = jnp.stack([fold_w(wp2[b * h:(b + 1) * h, :]) for b in range(nb)]
                     ).astype(jnp.bfloat16)
    return dict(wp1=wp1f, sp1=sp1f, bp1=bp1f,
                w1=w1s, s1=s1s, b1=b1s,
                w2=w2s, s2=s2s, b2=b2s,
                wp2=wp2s, sp2=fold_v(sp2), bp2=fold_v(bp2))


# --------------------------------- forward ---------------------------------

def c2f_forward(x_nchw, prep):
    """C2fBlock.forward (NCHW in/out) as one fused Pallas kernel, grid=(batch,)."""
    x = jnp.transpose(x_nchw, (0, 2, 3, 1))                 # NHWC
    B, H, W, Cin = x.shape
    wdo = prep["wp2"].shape[2]
    d_o = wdo // W
    xf = x.reshape(B, H, W * Cin)                            # free reshape

    const2 = lambda b: (0, 0)
    const3 = lambda b: (0, 0, 0)

    # TODO(synk): for feature maps whose per-batch slab exceeds a few MiB, split
    #             the grid into row tiles with halo recomputation; at C2f sizes
    #             the whole per-batch working set is VMEM-resident.
    out = pl.pallas_call(
        _c2f_fused_kernel,
        out_shape=jax.ShapeDtypeStruct((B, H, wdo), jnp.float32),
        grid=(B,),
        in_specs=[
            pl.BlockSpec((1, H, W * Cin), lambda b: (b, 0, 0)),
            pl.BlockSpec(prep["wp1"].shape, const2),         # resident weights
            pl.BlockSpec(prep["sp1"].shape, const2),
            pl.BlockSpec(prep["bp1"].shape, const2),
            pl.BlockSpec(prep["w1"].shape, const3),
            pl.BlockSpec(prep["s1"].shape, const3),
            pl.BlockSpec(prep["b1"].shape, const3),
            pl.BlockSpec(prep["w2"].shape, const3),
            pl.BlockSpec(prep["s2"].shape, const3),
            pl.BlockSpec(prep["b2"].shape, const3),
            pl.BlockSpec(prep["wp2"].shape, const3),
            pl.BlockSpec(prep["sp2"].shape, const2),
            pl.BlockSpec(prep["bp2"].shape, const2),
        ],
        out_specs=pl.BlockSpec((1, H, wdo), lambda b: (b, 0, 0)),
        compiler_params=pltpu.CompilerParams(
            dimension_semantics=("parallel",),
            vmem_limit_bytes=_vmem_limit_bytes()),
    )(xf, prep["wp1"], prep["sp1"], prep["bp1"],
      prep["w1"], prep["s1"], prep["b1"],
      prep["w2"], prep["s2"], prep["b2"],
      prep["wp2"], prep["sp2"], prep["bp2"])
    return jnp.transpose(out.reshape(B, H, W, d_o), (0, 3, 1, 2))


# ----------------------- pure-JAX reference (for check) --------------------

def _silu(x):
    return x * jax.nn.sigmoid(x)


def c2f_forward_ref(x_nchw, params):
    x = jnp.transpose(x_nchw, (0, 2, 3, 1))

    def pw_ref(x, w, s, b):
        y = jnp.einsum("bhwc,co->bhwo", x, w,
                       precision=jax.lax.Precision.HIGHEST)
        return _silu(y * s + b)

    def conv3_ref(x, res, w, s, b):
        y = jax.lax.conv_general_dilated(
            x, w, (1, 1), "SAME",
            dimension_numbers=("NHWC", "HWIO", "NHWC"),
            precision=jax.lax.Precision.HIGHEST)
        return res + _silu(y * s + b)

    y = pw_ref(x, *params["p1"])
    h = y.shape[-1] // 2
    xs = [y[..., :h], y[..., h:]]
    for bp in params["bottlenecks"]:
        z = xs[-1]
        t = pw_ref(z, *bp["conv1"])
        xs.append(conv3_ref(t, z, *bp["conv2"]))
    out = pw_ref(jnp.concatenate(xs, axis=-1), *params["p2"])
    return jnp.transpose(out, (0, 3, 1, 2))


# ------------------------------ parameter init -----------------------------

def init_params(key, d_i, d_o, depth):
    h = d_o // 2
    kit = iter(jax.random.split(key, 128))

    def conv_bn(cin, cout, ksize):
        w = jax.random.normal(next(kit), (ksize, ksize, cin, cout), jnp.float32)
        w = w / jnp.sqrt(float(cin * ksize * ksize))
        b_conv = 0.05 * jax.random.normal(next(kit), (cout,), jnp.float32)
        gamma = jax.random.uniform(next(kit), (cout,), jnp.float32, 0.5, 1.5)
        beta = 0.1 * jax.random.normal(next(kit), (cout,), jnp.float32)
        mean = 0.1 * jax.random.normal(next(kit), (cout,), jnp.float32)
        var = jax.random.uniform(next(kit), (cout,), jnp.float32, 0.5, 1.5)
        scale = gamma / jnp.sqrt(var + BN_EPS)              # fold BN (+ conv bias)
        bias = scale * (b_conv - mean) + beta
        return w, scale, bias

    w, s, b = conv_bn(d_i, 2 * h, 1)
    p1 = (w[0, 0], s, b)                                    # 1x1 -> (Cin, Cout)
    bottlenecks = []
    for _ in range(depth):
        w1, s1, b1 = conv_bn(h, h // 2, 1)
        c1 = (w1[0, 0], s1, b1)
        c2 = conv_bn(h // 2, h, 3)
        bottlenecks.append({"conv1": c1, "conv2": c2})
    w, s, b = conv_bn((2 + depth) * h, d_o, 1)
    p2 = (w[0, 0], s, b)
    return {"p1": p1, "bottlenecks": bottlenecks, "p2": p2}


# ----------------------------------- main -----------------------------------

if __name__ == "__main__":
    B, d_i, d_o, H, W, depth = 2, 8, 16, 16, 16, 2
    key = jax.random.PRNGKey(0)
    kx, kp = jax.random.split(key)
    x = jax.random.normal(kx, (B, d_i, H, W), jnp.float32)   # NCHW, like torch
    params = init_params(kp, d_i, d_o, depth)
    prep = prepare_c2f_params(params, W)                     # folded once, outside jit

    fwd = jax.jit(c2f_forward)
    out = jax.block_until_ready(fwd(x, prep))
    ref = jax.block_until_ready(c2f_forward_ref(x, params))

    assert out.shape == (B, d_o, H, W), out.shape
    err = float(jnp.max(jnp.abs(out - ref)))
    # bf16 MXU operands with f32 accumulation -> slightly looser tolerance.
    assert err < 2e-2, err
    print("KERNEL_OK")
</pallas_src>

<mosaic_0001>
module attributes {stable_mosaic.version = 11 : i64} {
  func.func @_c2f_fused_kernel(%arg0: i32, %arg1: memref<1x16x128xf32, #tpu.memory_space<vmem>>, %arg2: memref<128x256xbf16, #tpu.memory_space<vmem>>, %arg3: memref<1x256xf32, #tpu.memory_space<vmem>>, %arg4: memref<1x256xf32, #tpu.memory_space<vmem>>, %arg5: memref<2x128x64xbf16, #tpu.memory_space<vmem>>, %arg6: memref<2x1x64xf32, #tpu.memory_space<vmem>>, %arg7: memref<2x1x64xf32, #tpu.memory_space<vmem>>, %arg8: memref<2x192x128xbf16, #tpu.memory_space<vmem>>, %arg9: memref<2x1x128xf32, #tpu.memory_space<vmem>>, %arg10: memref<2x1x128xf32, #tpu.memory_space<vmem>>, %arg11: memref<4x128x256xbf16, #tpu.memory_space<vmem>>, %arg12: memref<1x256xf32, #tpu.memory_space<vmem>>, %arg13: memref<1x256xf32, #tpu.memory_space<vmem>>, %arg14: memref<1x16x256xf32, #tpu.memory_space<vmem>>) attributes {dimension_semantics = [#tpu.dimension_semantics<parallel>], iteration_bounds = array<i64: 2>, scalar_prefetch = 0 : i64, scratch_operands = 0 : i64, tpu.core_type = #tpu.core_type<tc>, window_params = [{transform_indices = @transform_0, window_bounds = array<i64: 1, 16, 128>}, {pipeline_mode = #tpu.pipeline_mode<synchronous>, transform_indices = @transform_1, window_bounds = array<i64: 128, 256>}, {pipeline_mode = #tpu.pipeline_mode<synchronous>, transform_indices = @transform_2, window_bounds = array<i64: 1, 256>}, {pipeline_mode = #tpu.pipeline_mode<synchronous>, transform_indices = @transform_3, window_bounds = array<i64: 1, 256>}, {pipeline_mode = #tpu.pipeline_mode<synchronous>, transform_indices = @transform_4, window_bounds = array<i64: 2, 128, 64>}, {pipeline_mode = #tpu.pipeline_mode<synchronous>, transform_indices = @transform_5, window_bounds = array<i64: 2, 1, 64>}, {pipeline_mode = #tpu.pipeline_mode<synchronous>, transform_indices = @transform_6, window_bounds = array<i64: 2, 1, 64>}, {pipeline_mode = #tpu.pipeline_mode<synchronous>, transform_indices = @transform_7, window_bounds = array<i64: 2, 192, 128>}, {pipeline_mode = #tpu.pipeline_mode<synchronous>, transform_indices = @transform_8, window_bounds = array<i64: 2, 1, 128>}, {pipeline_mode = #tpu.pipeline_mode<synchronous>, transform_indices = @transform_9, window_bounds = array<i64: 2, 1, 128>}, {pipeline_mode = #tpu.pipeline_mode<synchronous>, transform_indices = @transform_10, window_bounds = array<i64: 4, 128, 256>}, {pipeline_mode = #tpu.pipeline_mode<synchronous>, transform_indices = @transform_11, window_bounds = array<i64: 1, 256>}, {pipeline_mode = #tpu.pipeline_mode<synchronous>, transform_indices = @transform_12, window_bounds = array<i64: 1, 256>}, {transform_indices = @transform_13, window_bounds = array<i64: 1, 16, 256>}]} {
    %c0 = arith.constant 0 : index
    %c0_0 = arith.constant 0 : index
    %c0_1 = arith.constant 0 : index
    %0 = vector.load %arg1[%c0, %c0_0, %c0_1] : memref<1x16x128xf32, #tpu.memory_space<vmem>>, vector<1x16x128xf32>
    %1 = vector.shape_cast %0 : vector<1x16x128xf32> to vector<16x128xf32>
    %2 = arith.truncf %1 : vector<16x128xf32> to vector<16x128xbf16>
    %c0_2 = arith.constant 0 : index
    %c0_3 = arith.constant 0 : index
    %3 = vector.load %arg2[%c0_2, %c0_3] : memref<128x256xbf16, #tpu.memory_space<vmem>>, vector<128x256xbf16>
    %cst = arith.constant dense<0.000000e+00> : vector<16x256xf32>
    %4 = tpu.matmul %2, %3, %cst {dimension_numbers = #tpu.dot_dimension_numbers<[1], [0], [0], [1], [0, 0, 1, 1], [], []>} : vector<16x128xbf16>, vector<128x256xbf16>, vector<16x256xf32> -> vector<16x256xf32>
    %c0_4 = arith.constant 0 : index
    %c0_5 = arith.constant 0 : index
    %5 = vector.load %arg3[%c0_4, %c0_5] : memref<1x256xf32, #tpu.memory_space<vmem>>, vector<1x256xf32>
    %c0_6 = arith.constant 0 : index
    %c0_7 = arith.constant 0 : index
    %6 = vector.load %arg4[%c0_6, %c0_7] : memref<1x256xf32, #tpu.memory_space<vmem>>, vector<1x256xf32>
    %7 = vector.broadcast %5 : vector<1x256xf32> to vector<16x256xf32>
    %8 = arith.mulf %4, %7 : vector<16x256xf32>
    %9 = vector.broadcast %6 : vector<1x256xf32> to vector<16x256xf32>
    %10 = arith.addf %8, %9 : vector<16x256xf32>
    %11 = arith.negf %10 : vector<16x256xf32>
    %12 = math.exp %11 : vector<16x256xf32>
    %cst_8 = arith.constant 1.000000e+00 : f32
    %13 = vector.broadcast %cst_8 : f32 to vector<16x256xf32>
    %14 = arith.addf %13, %12 : vector<16x256xf32>
    %15 = arith.divf %13, %14 : vector<16x256xf32>
    %16 = arith.mulf %10, %15 : vector<16x256xf32>
    %17 = vector.extract_strided_slice %16 {offsets = [0, 0], sizes = [16, 128], strides = [1, 1]} : vector<16x256xf32> to vector<16x128xf32>
    %18 = vector.extract_strided_slice %16 {offsets = [0, 128], sizes = [16, 128], strides = [1, 1]} : vector<16x256xf32> to vector<16x128xf32>
    %cst_9 = arith.constant 0.000000e+00 : f32
    %19 = vector.broadcast %cst_9 : f32 to vector<1x64xf32>
    %20 = arith.truncf %18 : vector<16x128xf32> to vector<16x128xbf16>
    %c0_10 = arith.constant 0 : index
    %c0_11 = arith.constant 0 : index
    %c0_12 = arith.constant 0 : index
    %21 = vector.load %arg5[%c0_10, %c0_11, %c0_12] : memref<2x128x64xbf16, #tpu.memory_space<vmem>>, vector<1x128x64xbf16>
    %22 = vector.shape_cast %21 : vector<1x128x64xbf16> to vector<128x64xbf16>
    %cst_13 = arith.constant dense<0.000000e+00> : vector<16x64xf32>
    %23 = tpu.matmul %20, %22, %cst_13 {dimension_numbers = #tpu.dot_dimension_numbers<[1], [0], [0], [1], [0, 0, 1, 1], [], []>} : vector<16x128xbf16>, vector<128x64xbf16>, vector<16x64xf32> -> vector<16x64xf32>
    %c0_14 = arith.constant 0 : index
    %c0_15 = arith.constant 0 : index
    %c0_16 = arith.constant 0 : index
    %24 = vector.load %arg6[%c0_14, %c0_15, %c0_16] : memref<2x1x64xf32, #tpu.memory_space<vmem>>, vector<1x1x64xf32>
    %25 = vector.shape_cast %24 : vector<1x1x64xf32> to vector<1x64xf32>
    %c0_17 = arith.constant 0 : index
    %c0_18 = arith.constant 0 : index
    %c0_19 = arith.constant 0 : index
    %26 = vector.load %arg7[%c0_17, %c0_18, %c0_19] : memref<2x1x64xf32, #tpu.memory_space<vmem>>, vector<1x1x64xf32>
    %27 = vector.shape_cast %26 : vector<1x1x64xf32> to vector<1x64xf32>
    %28 = vector.broadcast %25 : vector<1x64xf32> to vector<16x64xf32>
    %29 = arith.mulf %23, %28 : vector<16x64xf32>
    %30 = vector.broadcast %27 : vector<1x64xf32> to vector<16x64xf32>
    %31 = arith.addf %29, %30 : vector<16x64xf32>
    %32 = arith.negf %31 : vector<16x64xf32>
    %33 = math.exp %32 : vector<16x64xf32>
    %cst_20 = arith.constant 1.000000e+00 : f32
    %34 = vector.broadcast %cst_20 : f32 to vector<16x64xf32>
    %35 = arith.addf %34, %33 : vector<16x64xf32>
    %36 = arith.divf %34, %35 : vector<16x64xf32>
    %37 = arith.mulf %31, %36 : vector<16x64xf32>
    %38 = vector.extract_strided_slice %37 {offsets = [0, 0], sizes = [15, 64], strides = [1, 1]} : vector<16x64xf32> to vector<15x64xf32>
    %39 = tpu.concatenate %19, %38 in 0 : vector<1x64xf32>, vector<15x64xf32> -> vector<16x64xf32>
    %40 = vector.extract_strided_slice %37 {offsets = [1, 0], sizes = [15, 64], strides = [1, 1]} : vector<16x64xf32> to vector<15x64xf32>
    %41 = tpu.concatenate %40, %19 in 0 : vector<15x64xf32>, vector<1x64xf32> -> vector<16x64xf32>
    %42 = tpu.concatenate %39, %37, %41 in 1 : vector<16x64xf32>, vector<16x64xf32>, vector<16x64xf32> -> vector<16x192xf32>
    %43 = arith.truncf %42 : vector<16x192xf32> to vector<16x192xbf16>
    %c0_21 = arith.constant 0 : index
    %c0_22 = arith.constant 0 : index
    %c0_23 = arith.constant 0 : index
    %44 = vector.load %arg8[%c0_21, %c0_22, %c0_23] : memref<2x192x128xbf16, #tpu.memory_space<vmem>>, vector<1x192x128xbf16>
    %45 = vector.shape_cast %44 : vector<1x192x128xbf16> to vector<192x128xbf16>
    %cst_24 = arith.constant dense<0.000000e+00> : vector<16x128xf32>
    %46 = tpu.matmul %43, %45, %cst_24 {dimension_numbers = #tpu.dot_dimension_numbers<[1], [0], [0], [1], [0, 0, 1, 1], [], []>} : vector<16x192xbf16>, vector<192x128xbf16>, vector<16x128xf32> -> vector<16x128xf32>
    %c0_25 = arith.constant 0 : index
    %c0_26 = arith.constant 0 : index
    %c0_27 = arith.constant 0 : index
    %47 = vector.load %arg9[%c0_25, %c0_26, %c0_27] : memref<2x1x128xf32, #tpu.memory_space<vmem>>, vector<1x1x128xf32>
    %48 = vector.shape_cast %47 : vector<1x1x128xf32> to vector<1x128xf32>
    %c0_28 = arith.constant 0 : index
    %c0_29 = arith.constant 0 : index
    %c0_30 = arith.constant 0 : index
    %49 = vector.load %arg10[%c0_28, %c0_29, %c0_30] : memref<2x1x128xf32, #tpu.memory_space<vmem>>, vector<1x1x128xf32>
    %50 = vector.shape_cast %49 : vector<1x1x128xf32> to vector<1x128xf32>
    %51 = vector.broadcast %48 : vector<1x128xf32> to vector<16x128xf32>
    %52 = arith.mulf %46, %51 : vector<16x128xf32>
    %53 = vector.broadcast %50 : vector<1x128xf32> to vector<16x128xf32>
    %54 = arith.addf %52, %53 : vector<16x128xf32>
    %55 = arith.negf %54 : vector<16x128xf32>
    %56 = math.exp %55 : vector<16x128xf32>
    %cst_31 = arith.constant 1.000000e+00 : f32
    %57 = vector.broadcast %cst_31 : f32 to vector<16x128xf32>
    %58 = arith.addf %57, %56 : vector<16x128xf32>
    %59 = arith.divf %57, %58 : vector<16x128xf32>
    %60 = arith.mulf %54, %59 : vector<16x128xf32>
    %61 = arith.addf %18, %60 : vector<16x128xf32>
    %62 = arith.truncf %61 : vector<16x128xf32> to vector<16x128xbf16>
    %c1 = arith.constant 1 : index
    %c0_32 = arith.constant 0 : index
    %c0_33 = arith.constant 0 : index
    %63 = vector.load %arg5[%c1, %c0_32, %c0_33] : memref<2x128x64xbf16, #tpu.memory_space<vmem>>, vector<1x128x64xbf16>
    %64 = vector.shape_cast %63 : vector<1x128x64xbf16> to vector<128x64xbf16>
    %cst_34 = arith.constant dense<0.000000e+00> : vector<16x64xf32>
    %65 = tpu.matmul %62, %64, %cst_34 {dimension_numbers = #tpu.dot_dimension_numbers<[1], [0], [0], [1], [0, 0, 1, 1], [], []>} : vector<16x128xbf16>, vector<128x64xbf16>, vector<16x64xf32> -> vector<16x64xf32>
    %c1_35 = arith.constant 1 : index
    %c0_36 = arith.constant 0 : index
    %c0_37 = arith.constant 0 : index
    %66 = vector.load %arg6[%c1_35, %c0_36, %c0_37] : memref<2x1x64xf32, #tpu.memory_space<vmem>>, vector<1x1x64xf32>
    %67 = vector.shape_cast %66 : vector<1x1x64xf32> to vector<1x64xf32>
    %c1_38 = arith.constant 1 : index
    %c0_39 = arith.constant 0 : index
    %c0_40 = arith.constant 0 : index
    %68 = vector.load %arg7[%c1_38, %c0_39, %c0_40] : memref<2x1x64xf32, #tpu.memory_space<vmem>>, vector<1x1x64xf32>
    %69 = vector.shape_cast %68 : vector<1x1x64xf32> to vector<1x64xf32>
    %70 = vector.broadcast %67 : vector<1x64xf32> to vector<16x64xf32>
    %71 = arith.mulf %65, %70 : vector<16x64xf32>
    %72 = vector.broadcast %69 : vector<1x64xf32> to vector<16x64xf32>
    %73 = arith.addf %71, %72 : vector<16x64xf32>
    %74 = arith.negf %73 : vector<16x64xf32>
    %75 = math.exp %74 : vector<16x64xf32>
    %cst_41 = arith.constant 1.000000e+00 : f32
    %76 = vector.broadcast %cst_41 : f32 to vector<16x64xf32>
    %77 = arith.addf %76, %75 : vector<16x64xf32>
    %78 = arith.divf %76, %77 : vector<16x64xf32>
    %79 = arith.mulf %73, %78 : vector<16x64xf32>
    %80 = vector.extract_strided_slice %79 {offsets = [0, 0], sizes = [15, 64], strides = [1, 1]} : vector<16x64xf32> to vector<15x64xf32>
    %81 = tpu.concatenate %19, %80 in 0 : vector<1x64xf32>, vector<15x64xf32> -> vector<16x64xf32>
    %82 = vector.extract_strided_slice %79 {offsets = [1, 0], sizes = [15, 64], strides = [1, 1]} : vector<16x64xf32> to vector<15x64xf32>
    %83 = tpu.concatenate %82, %19 in 0 : vector<15x64xf32>, vector<1x64xf32> -> vector<16x64xf32>
    %84 = tpu.concatenate %81, %79, %83 in 1 : vector<16x64xf32>, vector<16x64xf32>, vector<16x64xf32> -> vector<16x192xf32>
    %85 = arith.truncf %84 : vector<16x192xf32> to vector<16x192xbf16>
    %c1_42 = arith.constant 1 : index
    %c0_43 = arith.constant 0 : index
    %c0_44 = arith.constant 0 : index
    %86 = vector.load %arg8[%c1_42, %c0_43, %c0_44] : memref<2x192x128xbf16, #tpu.memory_space<vmem>>, vector<1x192x128xbf16>
    %87 = vector.shape_cast %86 : vector<1x192x128xbf16> to vector<192x128xbf16>
    %cst_45 = arith.constant dense<0.000000e+00> : vector<16x128xf32>
    %88 = tpu.matmul %85, %87, %cst_45 {dimension_numbers = #tpu.dot_dimension_numbers<[1], [0], [0], [1], [0, 0, 1, 1], [], []>} : vector<16x192xbf16>, vector<192x128xbf16>, vector<16x128xf32> -> vector<16x128xf32>
    %c1_46 = arith.constant 1 : index
    %c0_47 = arith.constant 0 : index
    %c0_48 = arith.constant 0 : index
    %89 = vector.load %arg9[%c1_46, %c0_47, %c0_48] : memref<2x1x128xf32, #tpu.memory_space<vmem>>, vector<1x1x128xf32>
    %90 = vector.shape_cast %89 : vector<1x1x128xf32> to vector<1x128xf32>
    %c1_49 = arith.constant 1 : index
    %c0_50 = arith.constant 0 : index
    %c0_51 = arith.constant 0 : index
    %91 = vector.load %arg10[%c1_49, %c0_50, %c0_51] : memref<2x1x128xf32, #tpu.memory_space<vmem>>, vector<1x1x128xf32>
    %92 = vector.shape_cast %91 : vector<1x1x128xf32> to vector<1x128xf32>
    %93 = vector.broadcast %90 : vector<1x128xf32> to vector<16x128xf32>
    %94 = arith.mulf %88, %93 : vector<16x128xf32>
    %95 = vector.broadcast %92 : vector<1x128xf32> to vector<16x128xf32>
    %96 = arith.addf %94, %95 : vector<16x128xf32>
    %97 = arith.negf %96 : vector<16x128xf32>
    %98 = math.exp %97 : vector<16x128xf32>
    %cst_52 = arith.constant 1.000000e+00 : f32
    %99 = vector.broadcast %cst_52 : f32 to vector<16x128xf32>
    %100 = arith.addf %99, %98 : vector<16x128xf32>
    %101 = arith.divf %99, %100 : vector<16x128xf32>
    %102 = arith.mulf %96, %101 : vector<16x128xf32>
    %103 = arith.addf %61, %102 : vector<16x128xf32>
    %cst_53 = arith.constant 0.000000e+00 : f32
    %104 = vector.broadcast %cst_53 : f32 to vector<16x256xf32>
    %105 = arith.truncf %17 : vector<16x128xf32> to vector<16x128xbf16>
    %c0_54 = arith.constant 0 : index
    %c0_55 = arith.constant 0 : index
    %c0_56 = arith.constant 0 : index
    %106 = vector.load %arg11[%c0_54, %c0_55, %c0_56] : memref<4x128x256xbf16, #tpu.memory_space<vmem>>, vector<1x128x256xbf16>
    %107 = vector.shape_cast %106 : vector<1x128x256xbf16> to vector<128x256xbf16>
    %cst_57 = arith.constant dense<0.000000e+00> : vector<16x256xf32>
    %108 = tpu.matmul %105, %107, %cst_57 {dimension_numbers = #tpu.dot_dimension_numbers<[1], [0], [0], [1], [0, 0, 1, 1], [], []>} : vector<16x128xbf16>, vector<128x256xbf16>, vector<16x256xf32> -> vector<16x256xf32>
    %109 = arith.addf %104, %108 : vector<16x256xf32>
    %110 = arith.truncf %18 : vector<16x128xf32> to vector<16x128xbf16>
    %c1_58 = arith.constant 1 : index
    %c0_59 = arith.constant 0 : index
    %c0_60 = arith.constant 0 : index
    %111 = vector.load %arg11[%c1_58, %c0_59, %c0_60] : memref<4x128x256xbf16, #tpu.memory_space<vmem>>, vector<1x128x256xbf16>
    %112 = vector.shape_cast %111 : vector<1x128x256xbf16> to vector<128x256xbf16>
    %cst_61 = arith.constant dense<0.000000e+00> : vector<16x256xf32>
    %113 = tpu.matmul %110, %112, %cst_61 {dimension_numbers = #tpu.dot_dimension_numbers<[1], [0], [0], [1], [0, 0, 1, 1], [], []>} : vector<16x128xbf16>, vector<128x256xbf16>, vector<16x256xf32> -> vector<16x256xf32>
    %114 = arith.addf %109, %113 : vector<16x256xf32>
    %115 = arith.truncf %61 : vector<16x128xf32> to vector<16x128xbf16>
    %c2 = arith.constant 2 : index
    %c0_62 = arith.constant 0 : index
    %c0_63 = arith.constant 0 : index
    %116 = vector.load %arg11[%c2, %c0_62, %c0_63] : memref<4x128x256xbf16, #tpu.memory_space<vmem>>, vector<1x128x256xbf16>
    %117 = vector.shape_cast %116 : vector<1x128x256xbf16> to vector<128x256xbf16>
    %cst_64 = arith.constant dense<0.000000e+00> : vector<16x256xf32>
    %118 = tpu.matmul %115, %117, %cst_64 {dimension_numbers = #tpu.dot_dimension_numbers<[1], [0], [0], [1], [0, 0, 1, 1], [], []>} : vector<16x128xbf16>, vector<128x256xbf16>, vector<16x256xf32> -> vector<16x256xf32>
    %119 = arith.addf %114, %118 : vector<16x256xf32>
    %120 = arith.truncf %103 : vector<16x128xf32> to vector<16x128xbf16>
    %c3 = arith.constant 3 : index
    %c0_65 = arith.constant 0 : index
    %c0_66 = arith.constant 0 : index
    %121 = vector.load %arg11[%c3, %c0_65, %c0_66] : memref<4x128x256xbf16, #tpu.memory_space<vmem>>, vector<1x128x256xbf16>
    %122 = vector.shape_cast %121 : vector<1x128x256xbf16> to vector<128x256xbf16>
    %cst_67 = arith.constant dense<0.000000e+00> : vector<16x256xf32>
    %123 = tpu.matmul %120, %122, %cst_67 {dimension_numbers = #tpu.dot_dimension_numbers<[1], [0], [0], [1], [0, 0, 1, 1], [], []>} : vector<16x128xbf16>, vector<128x256xbf16>, vector<16x256xf32> -> vector<16x256xf32>
    %124 = arith.addf %119, %123 : vector<16x256xf32>
    %c0_68 = arith.constant 0 : index
    %c0_69 = arith.constant 0 : index
    %125 = vector.load %arg12[%c0_68, %c0_69] : memref<1x256xf32, #tpu.memory_space<vmem>>, vector<1x256xf32>
    %c0_70 = arith.constant 0 : index
    %c0_71 = arith.constant 0 : index
    %126 = vector.load %arg13[%c0_70, %c0_71] : memref<1x256xf32, #tpu.memory_space<vmem>>, vector<1x256xf32>
    %127 = vector.broadcast %125 : vector<1x256xf32> to vector<16x256xf32>
    %128 = arith.mulf %124, %127 : vector<16x256xf32>
    %129 = vector.broadcast %126 : vector<1x256xf32> to vector<16x256xf32>
    %130 = arith.addf %128, %129 : vector<16x256xf32>
    %131 = arith.negf %130 : vector<16x256xf32>
    %132 = math.exp %131 : vector<16x256xf32>
    %cst_72 = arith.constant 1.000000e+00 : f32
    %133 = vector.broadcast %cst_72 : f32 to vector<16x256xf32>
    %134 = arith.addf %133, %132 : vector<16x256xf32>
    %135 = arith.divf %133, %134 : vector<16x256xf32>
    %136 = arith.mulf %130, %135 : vector<16x256xf32>
    %c0_73 = arith.constant 0 : index
    %c0_74 = arith.constant 0 : index
    %c0_75 = arith.constant 0 : index
    %137 = vector.load %arg14[%c0_73, %c0_74, %c0_75] : memref<1x16x256xf32, #tpu.memory_space<vmem>>, vector<1x16x256xf32>
    %138 = vector.shape_cast %137 : vector<1x16x256xf32> to vector<16x256xf32>
    %139 = vector.shape_cast %136 : vector<16x256xf32> to vector<1x16x256xf32>
    tpu.vector_store %arg14[%c0_73, %c0_74, %c0_75], %139 {strides = array<i32>} : memref<1x16x256xf32, #tpu.memory_space<vmem>>, vector<1x16x256xf32>,
    return
  }
  func.func @transform_0(%arg0: i32) -> (i32, i32, i32) {
    %c0_i32 = arith.constant 0 : i32
    %c0_i32_0 = arith.constant 0 : i32
    %c0_i32_1 = arith.constant 0 : i32
    return %arg0, %c0_i32, %c0_i32_0 : i32, i32, i32
  }
  func.func @transform_1(%arg0: i32) -> (i32, i32) {
    %c0_i32 = arith.constant 0 : i32
    %c0_i32_0 = arith.constant 0 : i32
    %c0_i32_1 = arith.constant 0 : i32
    return %c0_i32, %c0_i32_0 : i32, i32
  }
  func.func @transform_2(%arg0: i32) -> (i32, i32) {
    %c0_i32 = arith.constant 0 : i32
    %c0_i32_0 = arith.constant 0 : i32
    %c0_i32_1 = arith.constant 0 : i32
    return %c0_i32, %c0_i32_0 : i32, i32
  }
  func.func @transform_3(%arg0: i32) -> (i32, i32) {
    %c0_i32 = arith.constant 0 : i32
    %c0_i32_0 = arith.constant 0 : i32
    %c0_i32_1 = arith.constant 0 : i32
    return %c0_i32, %c0_i32_0 : i32, i32
  }
  func.func @transform_4(%arg0: i32) -> (i32, i32, i32) {
    %c0_i32 = arith.constant 0 : i32
    %c0_i32_0 = arith.constant 0 : i32
    %c0_i32_1 = arith.constant 0 : i32
    %c0_i32_2 = arith.constant 0 : i32
    return %c0_i32, %c0_i32_0, %c0_i32_1 : i32, i32, i32
  }
  func.func @transform_5(%arg0: i32) -> (i32, i32, i32) {
    %c0_i32 = arith.constant 0 : i32
    %c0_i32_0 = arith.constant 0 : i32
    %c0_i32_1 = arith.constant 0 : i32
    %c0_i32_2 = arith.constant 0 : i32
    return %c0_i32, %c0_i32_0, %c0_i32_1 : i32, i32, i32
  }
  func.func @transform_6(%arg0: i32) -> (i32, i32, i32) {
    %c0_i32 = arith.constant 0 : i32
    %c0_i32_0 = arith.constant 0 : i32
    %c0_i32_1 = arith.constant 0 : i32
    %c0_i32_2 = arith.constant 0 : i32
    return %c0_i32, %c0_i32_0, %c0_i32_1 : i32, i32, i32
  }
  func.func @transform_7(%arg0: i32) -> (i32, i32, i32) {
    %c0_i32 = arith.constant 0 : i32
    %c0_i32_0 = arith.constant 0 : i32
    %c0_i32_1 = arith.constant 0 : i32
    %c0_i32_2 = arith.constant 0 : i32
    return %c0_i32, %c0_i32_0, %c0_i32_1 : i32, i32, i32
  }
  func.func @transform_8(%arg0: i32) -> (i32, i32, i32) {
    %c0_i32 = arith.constant 0 : i32
    %c0_i32_0 = arith.constant 0 : i32
    %c0_i32_1 = arith.constant 0 : i32
    %c0_i32_2 = arith.constant 0 : i32
    return %c0_i32, %c0_i32_0, %c0_i32_1 : i32, i32, i32
  }
  func.func @transform_9(%arg0: i32) -> (i32, i32, i32) {
    %c0_i32 = arith.constant 0 : i32
    %c0_i32_0 = arith.constant 0 : i32
    %c0_i32_1 = arith.constant 0 : i32
    %c0_i32_2 = arith.constant 0 : i32
    return %c0_i32, %c0_i32_0, %c0_i32_1 : i32, i32, i32
  }
  func.func @transform_10(%arg0: i32) -> (i32, i32, i32) {
    %c0_i32 = arith.constant 0 : i32
    %c0_i32_0 = arith.constant 0 : i32
    %c0_i32_1 = arith.constant 0 : i32
    %c0_i32_2 = arith.constant 0 : i32
    return %c0_i32, %c0_i32_0, %c0_i32_1 : i32, i32, i32
  }
  func.func @transform_11(%arg0: i32) -> (i32, i32) {
    %c0_i32 = arith.constant 0 : i32
    %c0_i32_0 = arith.constant 0 : i32
    %c0_i32_1 = arith.constant 0 : i32
    return %c0_i32, %c0_i32_0 : i32, i32
  }
  func.func @transform_12(%arg0: i32) -> (i32, i32) {
    %c0_i32 = arith.constant 0 : i32
    %c0_i32_0 = arith.constant 0 : i32
    %c0_i32_1 = arith.constant 0 : i32
    return %c0_i32, %c0_i32_0 : i32, i32
  }
  func.func @transform_13(%arg0: i32) -> (i32, i32, i32) {
    %c0_i32 = arith.constant 0 : i32
    %c0_i32_0 = arith.constant 0 : i32
    %c0_i32_1 = arith.constant 0 : i32
    return %arg0, %c0_i32, %c0_i32_0 : i32, i32, i32
  }
}

</mosaic_0001>

<bundles_post_ra>
// kernel: c2f_forward.1
= control target key start
LH: loop header
LB: loop body
LE: loop exit
PB: predicated region body
PF: predicated region fallthrough
CT: control target
= control target key end

     0   :  { %s4136_s0 = inlined_call_operand.hbm [shape: f32[2,16,128], index: 0, kind: input, shape index: {}]   ;;  %s4137_s1 = inlined_call_operand.hbm [shape: bf16[128,256], index: 1, kind: input, shape index: {}]   ;;  %s4138_s2 = inlined_call_operand.hbm [shape: f32[1,256], index: 2, kind: input, shape index: {}]   ;;  %s4139_s3 = inlined_call_operand.hbm [shape: f32[1,256], index: 3, kind: input, shape index: {}]   ;;  %s4140_s4 = inlined_call_operand.hbm [shape: bf16[2,128,64], index: 4, kind: input, shape index: {}]   ;;  %s4141_s5 = inlined_call_operand.hbm [shape: f32[2,1,64], index: 5, kind: input, shape index: {}]   ;;  %s4142_s6 = inlined_call_operand.hbm [shape: f32[2,1,64], index: 6, kind: input, shape index: {}]   ;;  %s4143_s7 = inlined_call_operand.hbm [shape: bf16[2,192,128], index: 7, kind: input, shape index: {}]   ;;  %s4144_s8 = inlined_call_operand.hbm [shape: f32[2,1,128], index: 8, kind: input, shape index: {}]   ;;  %s4145_s9 = inlined_call_operand.hbm [shape: f32[2,1,128], index: 9, kind: input, shape index: {}]   ;;  %s4146_s10 = inlined_call_operand.hbm [shape: bf16[4,128,256], index: 10, kind: input, shape index: {}]   ;;  %s4147_s11 = inlined_call_operand.hbm [shape: f32[1,256], index: 11, kind: input, shape index: {}]   ;;  %s4148_s12 = inlined_call_operand.hbm [shape: f32[1,256], index: 12, kind: input, shape index: {}]   ;;  %s4149_s13 = inlined_call_operand.hbm [shape: f32[2,16,256], index: 13, kind: output, shape index: {}]  }
   0x1   :  { %4164 = sst [smem:[#allocation35_spill]] %s4136_s0 }
   0x2   :  { %4165 = sst [smem:[#allocation36_spill]] %s4137_s1 }
   0x3   :  { %4166 = sst [smem:[#allocation37_spill]] %s4138_s2 }
   0x4   :  { %4167 = sst [smem:[#allocation38_spill]] %s4139_s3 }
   0x5   :  { %4168 = sst [smem:[#allocation39_spill]] %s4149_s13 }
   0x6   :  { %18 = vsyncpa [#allocation3], 0 }
   0x7   :  { %20 = vsyncpa [#allocation3 + $0x1], 0 }
   0x8   :  { %21 = vsyncpa [#allocation6], 0 }
   0x9   :  { %22 = vsyncpa [#allocation9], 0 }
   0xa   :  { %23 = vsyncpa [#allocation12], 0 }
   0xb   :  { %24 = vsyncpa [#allocation15], 0 }
   0xc   :  { %25 = vsyncpa [#allocation18], 0 }
   0xd   :  { %26 = vsyncpa [#allocation21], 0 }
   0xe   :  { %27 = vsyncpa [#allocation4], 0 }
   0xf   :  { %29 = vsyncpa [#allocation4 + $0x1], 0  ;;  %s3566_s25 = smov 0   ;;  %s3568_s26 = smov 0  }
  0x10   :  { %s3570_s27 = smov 0   ;;  %s3572_s28 = smov 0  }
  0x11 LB: > { %4169 = sst [smem:[#allocation32_spill]] %s3456_s25  ;;  %s3470_s29 = smov [#allocation5]   ;;  %s3468_s28 = sphi %s3572_s28, %s4214_s28   ;;  %s3464_s27 = sphi %s3570_s27, %s4213_s27   ;;  %s3460_s26 = sphi %s3568_s26, %s4212_s26   ;;  %s3456_s25 = sphi %s3566_s25, %s4211_s25  }
  0x12   : > { %s356_s30 = sshll.u32 %s3470_s29, 4  ;;  %s3587_s14 = sadd.s32 4294967295, %s3468_s28   ;;  %s3592_s30 = int_to_ptr.vmem [resolvable:$true] %s356_s30 }
  0x13   : > { %4170 = sst [smem:[#allocation33_spill]] %s3587_s14  ;;  %p2344_p0 = scmp.ge.s32.totalorder %s3468_s28, 1 }
  0x14   : > { %p4160_p1 = scmp.eq.s32.totalorder %s3587_s14, 0  ;;  %p344_p2 = scmp.lt.s32.totalorder %s3468_s28, 3 }
  0x15   : > { %s3471_s16 = smov [#allocation8]   ;;  %s3472_s19 = smov [#allocation11]  }
  0x16   : > { %p3594_p3 = pnand %p2344_p0, %p344_p2  ;;  %s381_s17 = sshll.u32 %s3471_s16, 4  ;;  %s3607_s17 = int_to_ptr.vmem [resolvable:$true] %s381_s17 }
  0x17   : > { %s404_s20 = sshll.u32 %s3472_s19, 4  ;;  %s4174_s1 = sld [smem:[#allocation36_spill]]  ;;  %s3609_s20 = int_to_ptr.vmem [resolvable:$true] %s404_s20 }
  0x18   : > { %s4171_s15 = scalar_select %p3594_p3, 1, 0 }
  0x19   : > { %p2651_p5 = pneg %p3594_p3 }
  0x1a   : > { %4172 = sst [smem:[#allocation34_spill]] %s4171_s15 }
  0x1b   : > { %p3603_p6 = pnand %p2651_p5, %p4160_p1 }
  0x1d   : > { %s3012_s23 = scalar_lea.hbm %s4174_s1, 2048  ;;  %p3619_p8 = pneg %p3603_p6 }
  0x1e   : > { %p3013_p7 = scmp.ne.s32.totalorder %s4174_s1, %s3012_s23  ;;  %p3019_p11 = scmp.lt.u32.totalorder %s3012_s23, %s4174_s1 }
  0x20   : > { %p3015_p9 = pnand %p3619_p8, %p3013_p7 }
  0x22   : > { %p3016_p10 = pneg %p3015_p9 }
  0x24   : > { %p3021_p12 = pnand %p3019_p11, %p3016_p10 }
  0x26   : > { %3024 = shalt.err (!%p3021_p12)
}
  0x27   : > { %s3025_s21 = scalar_lea.vmem %s3592_s30, 2048  ;;  %p3033_p5 = scmp.lt.s32.totalorder %s3592_s30, %s3592_s30 }
  0x28   : > { %p3026_p13 = scmp.ne.s32.totalorder %s3592_s30, %s3025_s21  ;;  %p3034_p4 = scmp.lt.s32.totalorder %s3025_s21, %s3025_s21 }
  0x2a   : > { %p3028_p0 = pnand %p3026_p13, %p3619_p8  ;;  %p3035_p7 = por %p3034_p4, %p3033_p5 }
  0x2c   : > { %p3029_p2 = pneg %p3028_p0 }
  0x2e   : > { %p3036_p9 = pnand %p3035_p7, %p3029_p2 }
  0x30   : > { %3039 = shalt.err (!%p3036_p9)
}
  0x31   : > { %s4156_s22 = smov 128   ;;  %s4158_s13 = smov 8  }
  0x32   : > { %2654 = dma.hbm_to_vmem [thread:$0]  (!%p3603_p6), %s4174_s1, 2048, %s3592_s30, [#allocation6], %s4156_s22, %s4156_s22, %s4158_s13  }
  0x33   : > { %s4176_s3 = sld [smem:[#allocation38_spill]] }
  0x39   : > { %s3040_s21 = scalar_lea.hbm %s4176_s3, 32 }
  0x3a   : > { %p3041_p4 = scmp.ne.s32.totalorder %s4176_s3, %s3040_s21  ;;  %p3047_p12 = scmp.lt.u32.totalorder %s3040_s21, %s4176_s3 }
  0x3c   : > { %p3043_p10 = pnand %p3041_p4, %p3619_p8 }
  0x3e   : > { %p3044_p11 = pneg %p3043_p10 }
  0x40   : > { %p3049_p13 = pnand %p3047_p12, %p3044_p11 }
  0x42   : > { %3052 = shalt.err (!%p3049_p13)
}
  0x43   : > { %s3053_s30 = scalar_lea.vmem %s3607_s17, 32  ;;  %p3061_p7 = scmp.lt.s32.totalorder %s3607_s17, %s3607_s17 }
  0x44   : > { %p3054_p0 = scmp.ne.s32.totalorder %s3607_s17, %s3053_s30  ;;  %p3062_p9 = scmp.lt.s32.totalorder %s3053_s30, %s3053_s30 }
  0x46   : > { %p3056_p2 = pnand %p3054_p0, %p3619_p8  ;;  %p3063_p4 = por %p3062_p9, %p3061_p7 }
  0x48   : > { %p3057_p5 = pneg %p3056_p2 }
  0x4a   : > { %p3064_p10 = pnand %p3063_p4, %p3057_p5 }
  0x4c   : > { %3067 = shalt.err (!%p3064_p10)
}
  0x4d   : > { %2660 = dma.hbm_to_vmem [thread:$0]  (!%p3603_p6), %s4176_s3, 32, %s3607_s17, [#allocation9]  }
  0x4e   : > { %s3068_s23 = scalar_lea.hbm %s4141_s5, 32 }
  0x4f   : > { %p3069_p11 = scmp.ne.s32.totalorder %s4141_s5, %s3068_s23  ;;  %p3075_p0 = scmp.lt.u32.totalorder %s3068_s23, %s4141_s5 }
  0x51   : > { %p3071_p12 = pnand %p3069_p11, %p3619_p8 }
  0x53   : > { %p3072_p13 = pneg %p3071_p12 }
  0x55   : > { %p3077_p2 = pnand %p3075_p0, %p3072_p13 }
  0x57   : > { %3080 = shalt.err (!%p3077_p2)
}
  0x58   : > { %s3081_s17 = scalar_lea.vmem %s3609_s20, 32  ;;  %p3089_p4 = scmp.lt.s32.totalorder %s3609_s20, %s3609_s20 }
  0x59   : > { %p3082_p5 = scmp.ne.s32.totalorder %s3609_s20, %s3081_s17  ;;  %p3090_p10 = scmp.lt.s32.totalorder %s3081_s17, %s3081_s17 }
  0x5b   : > { %p3084_p7 = pnand %p3082_p5, %p3619_p8  ;;  %p3091_p11 = por %p3090_p10, %p3089_p4 }
  0x5d   : > { %p3085_p9 = pneg %p3084_p7 }
  0x5f   : > { %p3092_p12 = pnand %p3091_p11, %p3085_p9 }
  0x61   : > { %3095 = shalt.err (!%p3092_p12)
}
  0x62   : > { %s3475_s30 = smov 16   ;;  %s3476_s0 = smov 1  }
  0x63   : > { %2666 = dma.hbm_to_vmem [thread:$0]  (!%p3603_p6), %s4141_s5, 32, %s3609_s20, [#allocation12], %s3475_s30, %s3475_s30, %s3476_s0  }
  0x64   : > { %s3477_s15 = smov [#allocation14]   ;;  %s3478_s24 = smov [#allocation17]  }
  0x65   : > { %s430_s23 = sshll.u32 %s3477_s15, 4  ;;  %s456_s29 = sshll.u32 %s3478_s24, 4  ;;  %s431_s23 = int_to_ptr.vmem [resolvable:$true] %s430_s23  ;;  %s457_s29 = int_to_ptr.vmem [resolvable:$true] %s456_s29 }
  0x66   : > { %s3096_s17 = scalar_lea.hbm %s4143_s7, 3072 }
  0x67   : > { %p3097_p13 = scmp.ne.s32.totalorder %s4143_s7, %s3096_s17  ;;  %p3103_p5 = scmp.lt.u32.totalorder %s3096_s17, %s4143_s7 }
  0x69   : > { %p3099_p0 = pnand %p3097_p13, %p3619_p8 }
  0x6b   : > { %p3100_p2 = pneg %p3099_p0 }
  0x6d   : > { %p3105_p7 = pnand %p3103_p5, %p3100_p2 }
  0x6f   : > { %3108 = shalt.err (!%p3105_p7)
}
  0x70   : > { %s3109_s20 = scalar_lea.vmem %s431_s23, 3072  ;;  %p3117_p11 = scmp.lt.s32.totalorder %s431_s23, %s431_s23 }
  0x71   : > { %p3110_p9 = scmp.ne.s32.totalorder %s431_s23, %s3109_s20  ;;  %p3118_p12 = scmp.lt.s32.totalorder %s3109_s20, %s3109_s20 }
  0x73   : > { %p3112_p4 = pnand %p3110_p9, %p3619_p8  ;;  %p3119_p1 = por %p3118_p12, %p3117_p11 }
  0x75   : > { %p3113_p10 = pneg %p3112_p4 }
  0x77   : > { %p3120_p3 = pnand %p3119_p1, %p3113_p10 }
  0x79   : > { %3123 = shalt.err (!%p3120_p3)
}
  0x7a   : > { %s4162_s22 = smov 64   ;;  %s3480_s13 = smov 4  }
  0x7b   : > { %2672 = dma.hbm_to_vmem [thread:$0]  (!%p3603_p6), %s4143_s7, 3072, %s431_s23, [#allocation15], %s4162_s22, %s4162_s22, %s3480_s13  }
  0x7c   : > { %s3124_s15 = scalar_lea.hbm %s4145_s9, 32 }
  0x7d   : > { %p3125_p1 = scmp.ne.s32.totalorder %s4145_s9, %s3124_s15  ;;  %p3131_p0 = scmp.lt.u32.totalorder %s3124_s15, %s4145_s9 }
  0x7f   : > { %p3127_p3 = pnand %p3125_p1, %p3619_p8 }
  0x81   : > { %p3128_p13 = pneg %p3127_p3 }
  0x83   : > { %p3133_p2 = pnand %p3131_p0, %p3128_p13 }
  0x85   : > { %3136 = shalt.err (!%p3133_p2)
}
  0x86   : > { %s3137_s20 = scalar_lea.vmem %s457_s29, 32  ;;  %p3145_p4 = scmp.lt.s32.totalorder %s457_s29, %s457_s29 }
  0x87   : > { %p3138_p5 = scmp.ne.s32.totalorder %s457_s29, %s3137_s20  ;;  %p3146_p10 = scmp.lt.s32.totalorder %s3137_s20, %s3137_s20 }
  0x89   : > { %p3140_p7 = pnand %p3138_p5, %p3619_p8  ;;  %p3147_p11 = por %p3146_p10, %p3145_p4 }
  0x8b   : > { %p3141_p9 = pneg %p3140_p7 }
  0x8d   : > { %p3148_p12 = pnand %p3147_p11, %p3141_p9 }
  0x8f   : > { %3151 = shalt.err (!%p3148_p12)
}
  0x90   : > { %2678 = dma.hbm_to_vmem [thread:$0]  (!%p3603_p6), %s4145_s9, 32, %s457_s29, [#allocation18], %s3475_s30, %s3475_s30, %s3476_s0  }
  0x91   : > { %s3481_s3 = smov [#allocation20]   ;;  %s3482_s14 = smov [#allocation7]  }
  0x92   : > { %s483_s25 = sshll.u32 %s3481_s3, 4  ;;  %s370_s15 = sshll.u32 %s3482_s14, 4  ;;  %s484_s25 = int_to_ptr.vmem [resolvable:$true] %s483_s25  ;;  %s371_s15 = int_to_ptr.vmem [resolvable:$true] %s370_s15 }
  0x93   : > { %s3152_s21 = scalar_lea.hbm %s4147_s11, 32 }
  0x94   : > { %p3153_p1 = scmp.ne.s32.totalorder %s4147_s11, %s3152_s21  ;;  %p3159_p0 = scmp.lt.u32.totalorder %s3152_s21, %s4147_s11 }
  0x96   : > { %p3155_p3 = pnand %p3153_p1, %p3619_p8 }
  0x98   : > { %p3156_p13 = pneg %p3155_p3 }
  0x9a   : > { %p3161_p2 = pnand %p3159_p0, %p3156_p13 }
  0x9c   : > { %3164 = shalt.err (!%p3161_p2)
}
  0x9d   : > { %s3165_s29 = scalar_lea.vmem %s484_s25, 32  ;;  %p3173_p4 = scmp.lt.s32.totalorder %s484_s25, %s484_s25 }
  0x9e   : > { %p3166_p5 = scmp.ne.s32.totalorder %s484_s25, %s3165_s29  ;;  %p3174_p10 = scmp.lt.s32.totalorder %s3165_s29, %s3165_s29 }
  0xa0   : > { %p3168_p7 = pnand %p3166_p5, %p3619_p8  ;;  %p3175_p11 = por %p3174_p10, %p3173_p4 }
  0xa2   : > { %p3169_p9 = pneg %p3168_p7 }
  0xa4   : > { %p3176_p12 = pnand %p3175_p11, %p3169_p9 }
  0xa6   : > { %3179 = shalt.err (!%p3176_p12)
}
  0xa7   : > { %2684 = dma.hbm_to_vmem [thread:$0]  (!%p3603_p6), %s4147_s11, 32, %s484_s25, [#allocation21]  }
  0xa8   : > { %s4177_s2 = sld [smem:[#allocation37_spill]] }
  0xae   : > { %s3180_s24 = scalar_lea.hbm %s4177_s2, 32 }
  0xaf   : > { %p3181_p1 = scmp.ne.s32.totalorder %s4177_s2, %s3180_s24  ;;  %p3187_p0 = scmp.lt.u32.totalorder %s3180_s24, %s4177_s2 }
  0xb1   : > { %p3183_p3 = pnand %p3181_p1, %p3619_p8 }
  0xb3   : > { %p3184_p13 = pneg %p3183_p3 }
  0xb5   : > { %p3189_p2 = pnand %p3187_p0, %p3184_p13 }
  0xb7   : > { %3192 = shalt.err (!%p3189_p2)
}
  0xb8   : > { %s3193_s23 = scalar_lea.vmem %s371_s15, 32  ;;  %p3201_p4 = scmp.lt.s32.totalorder %s371_s15, %s371_s15 }
  0xb9   : > { %p3194_p5 = scmp.ne.s32.totalorder %s371_s15, %s3193_s23  ;;  %p3202_p10 = scmp.lt.s32.totalorder %s3193_s23, %s3193_s23 }
  0xbb   : > { %p3196_p7 = pnand %p3194_p5, %p3619_p8  ;;  %p3203_p11 = por %p3202_p10, %p3201_p4 }
  0xbd   : > { %p3197_p9 = pneg %p3196_p7 }
  0xbf   : > { %p3204_p12 = pnand %p3203_p11, %p3197_p9 }
  0xc1   : > { %3207 = shalt.err (!%p3204_p12)
}
  0xc2   : > { %2657 = dma.hbm_to_vmem [thread:$0]  (!%p3603_p6), %s4177_s2, 32, %s371_s15, [#allocation6]  }
  0xc3   : > { %s3483_s1 = smov [#allocation10]   ;;  %s3484_s22 = smov [#allocation13]  }
  0xc4   : > { %s391_s3 = sshll.u32 %s3483_s1, 4  ;;  %s417_s14 = sshll.u32 %s3484_s22, 4  ;;  %s392_s3 = int_to_ptr.vmem [resolvable:$true] %s391_s3  ;;  %s418_s14 = int_to_ptr.vmem [resolvable:$true] %s417_s14 }
  0xc5   : > { %s3208_s21 = scalar_lea.hbm %s4140_s4, 2048 }
  0xc6   : > { %p3209_p1 = scmp.ne.s32.totalorder %s4140_s4, %s3208_s21  ;;  %p3215_p0 = scmp.lt.u32.totalorder %s3208_s21, %s4140_s4 }
  0xc8   : > { %p3211_p3 = pnand %p3209_p1, %p3619_p8 }
  0xca   : > { %p3212_p13 = pneg %p3211_p3 }
  0xcc   : > { %p3217_p2 = pnand %p3215_p0, %p3212_p13 }
  0xce   : > { %3220 = shalt.err (!%p3217_p2)
}
  0xcf   : > { %s3221_s15 = scalar_lea.vmem %s392_s3, 2048  ;;  %p3229_p4 = scmp.lt.s32.totalorder %s392_s3, %s392_s3 }
  0xd0   : > { %p3222_p5 = scmp.ne.s32.totalorder %s392_s3, %s3221_s15  ;;  %p3230_p10 = scmp.lt.s32.totalorder %s3221_s15, %s3221_s15 }
  0xd2   : > { %p3224_p7 = pnand %p3222_p5, %p3619_p8  ;;  %p3231_p11 = por %p3230_p10, %p3229_p4 }
  0xd4   : > { %p3225_p9 = pneg %p3224_p7 }
  0xd6   : > { %p3232_p12 = pnand %p3231_p11, %p3225_p9 }
  0xd8   : > { %3235 = shalt.err (!%p3232_p12)
}
  0xd9   : > { %s4178_s29 = smov 64   ;;  %s3236_s21 = scalar_lea.hbm %s4142_s6, 32 }
  0xda   : > { %2663 = dma.hbm_to_vmem [thread:$0]  (!%p3603_p6), %s4140_s4, 2048, %s392_s3, [#allocation9], %s4178_s29, %s4178_s29, %s3480_s13  }
  0xdb   : > { %p3237_p1 = scmp.ne.s32.totalorder %s4142_s6, %s3236_s21  ;;  %p3243_p0 = scmp.lt.u32.totalorder %s3236_s21, %s4142_s6 }
  0xdd   : > { %p3239_p3 = pnand %p3237_p1, %p3619_p8 }
  0xdf   : > { %p3240_p13 = pneg %p3239_p3 }
  0xe1   : > { %p3245_p2 = pnand %p3243_p0, %p3240_p13 }
  0xe3   : > { %3248 = shalt.err (!%p3245_p2)
}
  0xe4   : > { %s3249_s15 = scalar_lea.vmem %s418_s14, 32  ;;  %p3257_p4 = scmp.lt.s32.totalorder %s418_s14, %s418_s14 }
  0xe5   : > { %p3250_p5 = scmp.ne.s32.totalorder %s418_s14, %s3249_s15  ;;  %p3258_p10 = scmp.lt.s32.totalorder %s3249_s15, %s3249_s15 }
  0xe7   : > { %p3252_p7 = pnand %p3250_p5, %p3619_p8  ;;  %p3259_p11 = por %p3258_p10, %p3257_p4 }
  0xe9   : > { %p3253_p9 = pneg %p3252_p7 }
  0xeb   : > { %p3260_p12 = pnand %p3259_p11, %p3253_p9 }
  0xed   : > { %3263 = shalt.err (!%p3260_p12)
}
  0xee   : > { %2669 = dma.hbm_to_vmem [thread:$0]  (!%p3603_p6), %s4142_s6, 32, %s418_s14, [#allocation12], %s3475_s30, %s3475_s30, %s3476_s0  }
  0xef   : > { %s3485_s29 = smov [#allocation16]   ;;  %s3486_s22 = smov [#allocation19]  }
  0xf0   : > { %s443_s1 = sshll.u32 %s3485_s29, 4  ;;  %s469_s24 = sshll.u32 %s3486_s22, 4  ;;  %s444_s1 = int_to_ptr.vmem [resolvable:$true] %s443_s1  ;;  %s470_s24 = int_to_ptr.vmem [resolvable:$true] %s469_s24 }
  0xf1   : > { %s3264_s17 = scalar_lea.hbm %s4144_s8, 32 }
  0xf2   : > { %p3265_p1 = scmp.ne.s32.totalorder %s4144_s8, %s3264_s17  ;;  %p3271_p0 = scmp.lt.u32.totalorder %s3264_s17, %s4144_s8 }
  0xf4   : > { %p3267_p3 = pnand %p3265_p1, %p3619_p8 }
  0xf6   : > { %p3268_p13 = pneg %p3267_p3 }
  0xf8   : > { %p3273_p2 = pnand %p3271_p0, %p3268_p13 }
  0xfa   : > { %3276 = shalt.err (!%p3273_p2)
}
  0xfb   : > { %s3277_s14 = scalar_lea.vmem %s444_s1, 32  ;;  %p3285_p4 = scmp.lt.s32.totalorder %s444_s1, %s444_s1 }
  0xfc   : > { %p3278_p5 = scmp.ne.s32.totalorder %s444_s1, %s3277_s14  ;;  %p3286_p10 = scmp.lt.s32.totalorder %s3277_s14, %s3277_s14 }
  0xfe   : > { %p3280_p7 = pnand %p3278_p5, %p3619_p8  ;;  %p3287_p11 = por %p3286_p10, %p3285_p4 }
 0x100   : > { %p3281_p9 = pneg %p3280_p7 }
 0x102   : > { %p3288_p12 = pnand %p3287_p11, %p3281_p9 }
 0x104   : > { %3291 = shalt.err (!%p3288_p12)
}
 0x105   : > { %2675 = dma.hbm_to_vmem [thread:$0]  (!%p3603_p6), %s4144_s8, 32, %s444_s1, [#allocation15], %s3475_s30, %s3475_s30, %s3476_s0  }
 0x106   : > { %s3292_s19 = scalar_lea.hbm %s4146_s10, 8192 }
 0x107   : > { %p3293_p1 = scmp.ne.s32.totalorder %s4146_s10, %s3292_s19  ;;  %p3299_p0 = scmp.lt.u32.totalorder %s3292_s19, %s4146_s10 }
 0x109   : > { %p3295_p3 = pnand %p3293_p1, %p3619_p8 }
 0x10b   : > { %p3296_p13 = pneg %p3295_p3 }
 0x10d   : > { %p3301_p2 = pnand %p3299_p0, %p3296_p13 }
 0x10f   : > { %3304 = shalt.err (!%p3301_p2)
}
 0x110   : > { %s3305_s25 = scalar_lea.vmem %s470_s24, 8192  ;;  %p3313_p4 = scmp.lt.s32.totalorder %s470_s24, %s470_s24 }
 0x111   : > { %p3306_p5 = scmp.ne.s32.totalorder %s470_s24, %s3305_s25  ;;  %p3314_p10 = scmp.lt.s32.totalorder %s3305_s25, %s3305_s25 }
 0x113   : > { %p3308_p7 = pnand %p3306_p5, %p3619_p8  ;;  %p3315_p11 = por %p3314_p10, %p3313_p4 }
 0x115   : > { %p3309_p9 = pneg %p3308_p7 }
 0x117   : > { %p3316_p12 = pnand %p3315_p11, %p3309_p9 }
 0x119   : > { %3319 = shalt.err (!%p3316_p12)
}
 0x11a   : > { %s4179_s30 = smov 8   ;;  %s4180_s0 = smov 128  }
 0x11b   : > { %2681 = dma.hbm_to_vmem [thread:$0]  (!%p3603_p6), %s4146_s10, 8192, %s470_s24, [#allocation18], %s4180_s0, %s4180_s0, %s4179_s30  }
 0x11c   : > { %s3487_s14 = smov [#allocation22]   ;;  %s3320_s22 = scalar_lea.hbm %s4148_s12, 32 }
 0x11d   : > { %s494_s13 = sshll.u32 %s3487_s14, 4  ;;  %p3321_p1 = scmp.ne.s32.totalorder %s4148_s12, %s3320_s22  ;;  %s495_s13 = int_to_ptr.vmem [resolvable:$true] %s494_s13 }
 0x11e   : > { %p3327_p0 = scmp.lt.u32.totalorder %s3320_s22, %s4148_s12 }
 0x11f   : > { %p3323_p3 = pnand %p3321_p1, %p3619_p8 }
 0x121   : > { %p3324_p13 = pneg %p3323_p3 }
 0x123   : > { %p3329_p2 = pnand %p3327_p0, %p3324_p13 }
 0x125   : > { %3332 = shalt.err (!%p3329_p2)
}
 0x126   : > { %s3333_s24 = scalar_lea.vmem %s495_s13, 32  ;;  %p3341_p4 = scmp.lt.s32.totalorder %s495_s13, %s495_s13 }
 0x127   : > { %p3334_p5 = scmp.ne.s32.totalorder %s495_s13, %s3333_s24  ;;  %p3342_p10 = scmp.lt.s32.totalorder %s3333_s24, %s3333_s24 }
 0x129   : > { %p3336_p7 = pnand %p3334_p5, %p3619_p8  ;;  %p3343_p11 = por %p3342_p10, %p3341_p4 }
 0x12b   : > { %p3337_p9 = pneg %p3336_p7 }
 0x12d   : > { %p3344_p12 = pnand %p3343_p11, %p3337_p9 }
 0x12f   : > { %3347 = shalt.err (!%p3344_p12)
}
 0x130   : > { %s4181_s16 = sld [smem:[#allocation32_spill]]  ;;  %s4182_s1 = sld [smem:[#allocation33_spill]] }
 0x131   : > { %2687 = dma.hbm_to_vmem [thread:$0]  (!%p3603_p6), %s4148_s12, 32, %s495_s13, [#allocation21]  }
 0x132   : > { %s2343_s15 = sadd.s32 4294967294, %s3468_s28   ;;  %s3874_s18 = sadd.s32 1, %s3468_s28  }
 0x133   : > { %s39_s14 = ssub.s32 %s3468_s28, %s3874_s18  ;;  %s42_s3 = sadd.s32 1, %s3464_s27 }
 0x134   : > { %p40_p8 = scmp.eq.s32.totalorder %s39_s14, 0  ;;  %p49_p1 = scmp.ne.s32.totalorder %s3464_s27, %s3460_s26 }
 0x135   : > { %p50_p3 = scmp.eq.s32.totalorder %s3468_s28, 0  ;;  %p337_p7 = scmp.eq.s32.totalorder %s2343_s15, 1 }
 0x136   : > { %p55_p13 = scmp.ne.s32.totalorder %s3460_s26, %s4181_s16  ;;  %p4184_p2 = scmp.eq.s32.totalorder %s4182_s1, 0 }
 0x137   : > { %s3885_s29 = scalar_select %p40_p8, %s3464_s27, %s42_s3  }
 0x138   : > { %p3887_p0 = por %p50_p3, %p49_p1  ;;  %p3893_p6 = por %p4184_p2, %p55_p13 }
 0x139   : > { %p331_p5 = scmp.eq.s32.totalorder %s4182_s1, 1  ;;  %p2708_p9 = scmp.lt.s32.totalorder %s3468_s28, 2 }
 0x13a   : > { %s505_s19 = sand.u32 1, %s3464_s27   ;;  %p3904_p10 = por %p337_p7, %p55_p13 }
 0x13b   : > { %p3900_p4 = por %p331_p5, %p49_p1  ;;  %s2358_s20 = sshll.u32 %s505_s19, 4 }
 0x13c   : > { %s4187_s17 = scalar_select %p3904_p10, 1, 0 }
 0x13d   : > { %s4186_s21 = scalar_select %p3900_p4, 1, 0 }
 0x13e   : > { %s2527_s24 = sshll.u32 %s3468_s28, 8  ;;  %s4188_s16 = sld [smem:[#allocation35_spill]] }
 0x13f   : > { %s509_s1 = scalar_lea.vmem [#allocation2], %s2358_s20  ;;  %p3918_p11 = pnand %p2708_p9, %p3887_p0 }
 0x140   : > { %s516_s15 = sshll.u32 %s509_s1, 4  ;;  %s3922_s2 = scalar_lea.sflag [#allocation3], %s505_s19  ;;  %s3914_s15 = int_to_ptr.vmem [resolvable:$true] %s516_s15 }
 0x141   : > { %p3350_p8 = pneg %p3918_p11 }
 0x144   : > { %s3912_s14 = scalar_lea.hbm %s4188_s16, %s2527_s24  ;;  %s3353_s22 = scalar_lea.hbm %s4188_s16, 512 }
 0x145   : > { %s3348_s23 = scalar_lea.hbm %s3912_s14, 256  ;;  %p3354_p13 = scmp.lt.u32.totalorder %s3912_s14, %s4188_s16 }
 0x146   : > { %p3349_p12 = scmp.ne.s32.totalorder %s3912_s14, %s3348_s23  ;;  %p3355_p0 = scmp.lt.u32.totalorder %s3353_s22, %s3348_s23 }
 0x147   : > { %p3357_p5 = scmp.lt.u32.totalorder %s3348_s23, %s3912_s14 }
 0x148   : > { %p3351_p1 = pnand %p3350_p8, %p3349_p12  ;;  %p3356_p2 = por %p3355_p0, %p3354_p13 }
 0x14a   : > { %p3352_p3 = pneg %p3351_p1  ;;  %p3358_p7 = por %p3357_p5, %p3356_p2 }
 0x14c   : > { %p3359_p9 = pnand %p3358_p7, %p3352_p3 }
 0x14e   : > { %3362 = shalt.err (!%p3359_p9)
}
 0x14f   : > { %s3363_s19 = scalar_lea.vmem %s3914_s15, 256  ;;  %s3488_s20 = smov [#allocation2]  }
 0x150   : > { %p3364_p12 = scmp.ne.s32.totalorder %s3914_s15, %s3363_s19  ;;  %s3368_s24 = sshll.u32 %s3488_s20, 4  ;;  %s3369_s24 = int_to_ptr.vmem [resolvable:$false] %s3368_s24 }
 0x151   : > { %s3370_s25 = scalar_lea.vmem %s3369_s24, 512  ;;  %p3371_p4 = scmp.lt.s32.totalorder %s3914_s15, %s3369_s24 }
 0x152   : > { %p3366_p1 = pnand %p3364_p12, %p3350_p8  ;;  %p3372_p13 = scmp.lt.s32.totalorder %s3370_s25, %s3363_s19 }
 0x154   : > { %p3367_p10 = pneg %p3366_p1  ;;  %p3373_p0 = por %p3372_p13, %p3371_p4 }
 0x156   : > { %p3374_p2 = pnand %p3373_p0, %p3367_p10 }
 0x158   : > { %3377 = shalt.err (!%p3374_p2)
}
 0x159   : > { %2691 = dma.hbm_to_vmem [thread:$0]  (!%p3918_p11), %s3912_s14, 256, %s3914_s15, %s3922_s2, %s4180_s0, %s4180_s0, %s4179_s30  }
 0x15a   : > { %s4190_s23 = sld [smem:[#allocation34_spill]] }
 0x160   : > { %p4191_p8 = scmp.ne.s32.totalorder %s4190_s23, 0 }
 0x161   : > { %s3956_s22 = sand.u32 (!%p4191_p8), 1, %s3460_s26  }
 0x162   : > { %528 = sbr.rel (%p4191_p8) target bundleno = 2167 (0x877), region = 72  ;;  %s2362_s1 = sshll.u32 (!%p4191_p8), %s3956_s22, 4 }
 0x163   : > { %s531_s19 = scalar_lea.sflag (!%p4191_p8), [#allocation3], %s3956_s22  ;;  %s3960_s20 = scalar_lea.vmem (!%p4191_p8), [#allocation2], %s2362_s1 }
 0x169   : > { %3423 = dma.done.wait (%p3893_p6), %s531_s19, 256  }
 0x16a   : > { %3425 = vsyncadd (%p3893_p6), %s531_s19, 4294967040  ;;  %s4192_s3 = sld [smem:[#allocation33_spill]] }
 0x170   : > { %p4193_p4 = scmp.eq.s32.totalorder %s4192_s3, 0 }
 0x172   : > { %3427 = dma.done.wait (%p4193_p4), [#allocation6], 2080   ;;  %p4194_p10 = pmov %p4193_p4 }
 0x173   : > { %p4195_p11 = pmov %p4193_p4 }
 0x174   : > { %3429 = vsyncadd (%p4194_p10), [#allocation6], 4294965216 }
 0x175   : > { %3431 = dma.done.wait (%p4195_p11), [#allocation9], 2080   ;;  %p4196_p3 = pmov %p4193_p4 }
 0x177   : > { %3433 = vsyncadd (%p4196_p3), [#allocation9], 4294965216  ;;  %p4197_p5 = pmov %p4196_p3 }
 0x178   : > { %p4198_p7 = pmov %p4196_p3 }
 0x179   : > { %3435 = dma.done.wait (%p4197_p5), [#allocation12], 64  }
 0x17a   : > { %3437 = vsyncadd (%p4198_p7), [#allocation12], 4294967232  ;;  %p4199_p6 = pmov %p4196_p3 }
 0x17b   : > { %p4200_p9 = pmov %p4196_p3 }
 0x17c   : > { %3439 = dma.done.wait (%p4199_p6), [#allocation15], 3104  }
 0x17d   : > { %3441 = vsyncadd (%p4200_p9), [#allocation15], 4294964192  ;;  %p4201_p12 = pmov %p4196_p3 }
 0x17e   : > { %p4202_p1 = pmov %p4196_p3 }
 0x17f   : > { %3443 = dma.done.wait (%p4201_p12), [#allocation18], 8224  }
 0x180   : > { %3445 = vsyncadd (%p4202_p1), [#allocation18], 4294959072  ;;  %p4203_p13 = pmov %p4202_p1 }
 0x181   : > { %p4204_p0 = pmov %p4202_p1 }
 0x182   : > { %3447 = dma.done.wait (%p4203_p13), [#allocation21], 64  }
 0x183   : > { %3449 = vsyncadd (%p4204_p0), [#allocation21], 4294967232  ;;  %v3489_v0 = vmov 0   ;;  %v2788_v1 = vld [vmem:[#allocation5 + $0x4] ss:$8 sps:$4 sm:$0xff]   ;;  %v3490_v23 = vmov 0.0   ;;  %v771_v46 = vlaneseq }
 0x184   : > { %757 = vmatprep.mubr.bf16.mxu0 %v3489_v0  ;;  %v2790_v2 = vld [vmem:[#allocation5] ss:$8 sps:$4 sm:$0xff]   ;;  %725 = vmatprep.subr.bf16.mxu0 %v2788_v1  ;;  %v2791_v3 = vld [vmem:[#allocation5 + $0x14] ss:$8 sps:$4 sm:$0xff]   ;;  %v2793_v4 = vld [vmem:[#allocation5 + $0x10] ss:$8 sps:$4 sm:$0xff]  }
 0x185   : > { %726 = vmatpush1.bf16.msra.mxu0 %v2790_v2  ;;  %v2794_v5 = vld [vmem:[#allocation5 + $0x24] ss:$8 sps:$4 sm:$0xff]   ;;  %v2796_v6 = vld [vmem:[#allocation5 + $0x20] ss:$8 sps:$4 sm:$0xff]   ;;  %v2797_v7 = vld [vmem:[#allocation5 + $0x34] ss:$8 sps:$4 sm:$0xff]   ;;  %2547 = vmatprep.subr.bf16.mxu1 %v3490_v23 }
 0x186   : > { %727 = vmatprep.subr.bf16.mxu0 %v2791_v3  ;;  %v2799_v8 = vld [vmem:[#allocation5 + $0x30] ss:$8 sps:$4 sm:$0xff]   ;;  %v2800_v9 = vld [vmem:[#allocation5 + $0x44] ss:$8 sps:$4 sm:$0xff]   ;;  %v2802_v10 = vld [vmem:[#allocation5 + $0x40] ss:$8 sps:$4 sm:$0xff]  }
 0x187   : > { %v2803_v11 = vld [vmem:[#allocation5 + $0x54] ss:$8 sps:$4 sm:$0xff]   ;;  %v2805_v12 = vld [vmem:[#allocation5 + $0x50] ss:$8 sps:$4 sm:$0xff]   ;;  %v2806_v13 = vld [vmem:[#allocation5 + $0x64] ss:$8 sps:$4 sm:$0xff]  }
 0x188   : > { %v2808_v14 = vld [vmem:[#allocation5 + $0x60] ss:$8 sps:$4 sm:$0xff]   ;;  %v2809_v15 = vld [vmem:[#allocation5 + $0x74] ss:$8 sps:$4 sm:$0xff]   ;;  %v2811_v16 = vld [vmem:[#allocation5 + $0x70] ss:$8 sps:$4 sm:$0xff]  }
 0x189   : > { %728 = vmatpush1.bf16.msra.mxu0 %v2793_v4  ;;  %v626_v17 = vld [vmem:[%s3960_s20] sm:$0xff]  ;;  %v627_v18 = vld [vmem:[%s3960_s20 + $0x8] sm:$0xff]  ;;  %vm3491_vm0 = vmmov 0   ;;  %v772_v47 = vshrl.u32 %v771_v46, 7  ;;  %vm975_vm1 = vcmask 1046528   ;;  %vm968_vm2 = vcmask 1040384  }
 0x18a   : > { %729 = vmatprep.subr.bf16.mxu0 %v2794_v5  ;;  %v628_v19 = vpack.c.bf16 %v627_v18, %v626_v17  ;;  %v2814_v20 = vld [vmem:[#allocation19 + $0x84] ss:$8 sps:$4 sm:$0xff]   ;;  %v2812_v21 = vld [vmem:[#allocation19 + $0x80] ss:$8 sps:$4 sm:$0xff]   ;;  %v2815_v22 = vld [vmem:[#allocation10] sm:$0xff]   ;;  %2563 = vmatprep.mubr.msk.bf16.mxu1 %vm3491_vm0, %v3490_v23  ;;  %s3492_s2 = smov 64  }
 0x18b   : > { %2548 = vmatpush3.bf16.msra.mxu1 %v2815_v22  ;;  %v2818_v24 = vld [vmem:[#allocation19 + $0x94] ss:$8 sps:$4 sm:$0xff]   ;;  %v2816_v25 = vld [vmem:[#allocation19 + $0x90] ss:$8 sps:$4 sm:$0xff]   ;;  %v2819_v26 = vld [vmem:[#allocation10 + $0x8] sm:$0xff]   ;;  %v4005_v48 = vsub.s32 0, %v772_v47 }
 0x18c   : > { %2549 = vmatprep.subr.bf16.mxu1 %v3490_v23  ;;  %v2822_v27 = vld [vmem:[#allocation19 + $0xa4] ss:$8 sps:$4 sm:$0xff]   ;;  %v2820_v28 = vld [vmem:[#allocation19 + $0xa0] ss:$8 sps:$4 sm:$0xff]   ;;  %v2826_v30 = vld [vmem:[#allocation19 + $0xb4] ss:$8 sps:$4 sm:$0xff]  }
 0x18d   : > { %730 = vmatpush1.bf16.msra.mxu0 %v2796_v6  ;;  %v2823_v29 = vld [vmem:[#allocation10 + $0x10] sm:$0xff]   ;;  %v2824_v31 = vld [vmem:[#allocation19 + $0xb0] ss:$8 sps:$4 sm:$0xff]   ;;  %v2834_v36 = vld [vmem:[#allocation19 + $0xd4] ss:$8 sps:$4 sm:$0xff]   ;;  %v4007_v50 = vsub.s32 1, %v772_v47 }
 0x18e   : > { %731 = vmatprep.subr.bf16.mxu0 %v2797_v7  ;;  %v2827_v32 = vld [vmem:[#allocation10 + $0x18] sm:$0xff]   ;;  %v2830_v33 = vld [vmem:[#allocation19 + $0xc4] ss:$8 sps:$4 sm:$0xff]   ;;  %v2828_v34 = vld [vmem:[#allocation19 + $0xc0] ss:$8 sps:$4 sm:$0xff]   ;;  %vm988_vm3 = vcmask 523264  }
 0x18f   : > { %2550 = vmatpush3.bf16.msra.mxu1 %v2819_v26  ;;  %v2831_v35 = vld [vmem:[#allocation10 + $0x20] sm:$0xff]   ;;  %v2835_v38 = vld [vmem:[#allocation10 + $0x28] sm:$0xff]   ;;  %v2839_v41 = vld [vmem:[#allocation10 + $0x30] sm:$0xff]   ;;  %s2375_s30 = sshll.u32 %s3956_s22, 5  ;;  %s2528_s14 = sshll.u32 %s4192_s3, 9 }
 0x190   : > { %2551 = vmatprep.subr.bf16.mxu1 %v3490_v23  ;;  %v2832_v37 = vld [vmem:[#allocation19 + $0xd0] ss:$8 sps:$4 sm:$0xff]   ;;  %v2838_v39 = vld [vmem:[#allocation19 + $0xe4] ss:$8 sps:$4 sm:$0xff]   ;;  %v2836_v40 = vld [vmem:[#allocation19 + $0xe0] ss:$8 sps:$4 sm:$0xff]  }
 0x191   : > { %732 = vmatpush1.bf16.msra.mxu0 %v2799_v8  ;;  %v2842_v42 = vld [vmem:[#allocation19 + $0xf4] ss:$8 sps:$4 sm:$0xff]   ;;  %v2840_v43 = vld [vmem:[#allocation19 + $0xf0] ss:$8 sps:$4 sm:$0xff]   ;;  %v2846_v45 = vld [vmem:[#allocation19 + $0x4] ss:$8 sps:$4 sm:$0xff]  }
 0x192   : > { %733 = vmatprep.subr.bf16.mxu0 %v2800_v9  ;;  %v2843_v44 = vld [vmem:[#allocation10 + $0x38] sm:$0xff]   ;;  %v2872_v47 = vld [vmem:[#allocation14 + $0x20] sm:$0xff]   ;;  %s624_s0 = scalar_lea.vmem [#allocation23], %s2375_s30  ;;  %s4205_s25 = sld [smem:[#allocation39_spill]] }
 0x193   : > { %2552 = vmatpush3.bf16.msra.mxu1 %v2823_v29  ;;  %v768_v49 = vld [vmem:[#allocation7] sm:$0x3]  ;;  %v769_v51 = vld [vmem:[#allocation8] sm:$0x3]  ;;  %s2156_s13 = sshll.u32 %s624_s0, 4  ;;  %s2143_s19 = scalar_lea.sflag [#allocation4], %s3956_s22  ;;  %s4087_s13 = int_to_ptr.vmem [resolvable:$true] %s2156_s13 }
 0x194   : > { %2553 = vmatprep.subr.bf16.mxu1 %v3490_v23  ;;  %v774_v52 = vrot.slane %v768_v49, %v4005_v48  ;;  %v778_v53 = vrot.slane %v768_v49, %v4007_v50  ;;  %v789_v54 = vrot.slane %v769_v51, %v4005_v48  ;;  %v793_v56 = vrot.slane %v769_v51, %v4007_v50  ;;  %v2849_v29 = vld [vmem:[#allocation19 + $0x14] ss:$8 sps:$4 sm:$0xff]   ;;  %v2873_v49 = vld [vmem:[#allocation14 + $0x28] sm:$0xff]   ;;  %v2874_v51 = vld [vmem:[#allocation14 + $0x30] sm:$0xff]   ;;  %s3378_s20 = scalar_lea.vmem %s4087_s13, 512  ;;  %p4207_p8 = scmp.ne.s32.totalorder %s4186_s21, 0 }
 0x195   : > { %734 = vmatpush1.bf16.msra.mxu0 %v2802_v10  ;;  %v2871_v46 = vld [vmem:[#allocation14 + $0x18] sm:$0xff]   ;;  %p3379_p2 = scmp.ne.s32.totalorder %s4087_s13, %s3378_s20  ;;  %s3493_s3 = smov [#allocation23]  }
 0x196   : > { %735 = vmatprep.subr.bf16.mxu0 %v2803_v11 }
 0x197   : > { %2554 = vmatpush3.bf16.msra.mxu1 %v2827_v32  ;;  %v2850_v32 = vld [vmem:[#allocation19 + $0x20] ss:$8 sps:$4 sm:$0xff]   ;;  %p3380_p4 = pnand %p3379_p2, %p4207_p8 }
 0x198   : > { %2555 = vmatprep.subr.bf16.mxu1 %v3490_v23  ;;  %s4206_s23 = smov %s4205_s25  ;;  %s4092_s1 = scalar_lea.hbm %s4205_s25, %s2528_s14 }
 0x199   : > { %736 = vmatpush1.bf16.msra.mxu0 %v2805_v12  ;;  %p3381_p10 = pneg %p3380_p4 }
 0x19a   : > { %737 = vmatprep.subr.bf16.mxu0 %v2806_v13 }
 0x19b   : > { %2556 = vmatpush3.bf16.msra.mxu1 %v2831_v35  ;;  %v2858_v35 = vld [vmem:[#allocation19 + $0x44] ss:$8 sps:$4 sm:$0xff]  }
 0x19c   : > { %2557 = vmatprep.subr.bf16.mxu1 %v3490_v23 }
 0x19d   : > { %738 = vmatpush1.bf16.msra.mxu0 %v2808_v14 }
 0x19e   : > { %739 = vmatprep.subr.bf16.mxu0 %v2809_v15 }
 0x19f   : > { %2558 = vmatpush3.bf16.msra.mxu1 %v2835_v38  ;;  %v2859_v38 = vld [vmem:[#allocation19 + $0x50] ss:$8 sps:$4 sm:$0xff]  }
 0x1a0   : > { %2559 = vmatprep.subr.bf16.mxu1 %v3490_v23 }
 0x1a1   : > { %740 = vmatpush1.bf16.msra.mxu0 %v2811_v16 }
 0x1a2   : > { %1623 = vmatprep.subr.bf16.mxu0 %v2814_v20 }
 0x1a3   : > { %2560 = vmatpush3.bf16.msra.mxu1 %v2839_v41  ;;  %v2867_v41 = vld [vmem:[#allocation19 + $0x74] ss:$8 sps:$4 sm:$0xff]  }
 0x1a4   : > { %758 = vmatmul.mubr.bf16.vlgmr.msra.gmra.mrb[0].mxu0 %v628_v19  ;;  %2561 = vmatprep.subr.bf16.mxu1 %v3490_v23 }
 0x1a5   : > { %1655 = vmatprep.mubr.bf16.mxu0 %v3489_v0  ;;  %1624 = vmatpush1.bf16.msra.mxu0 %v2812_v21 }
 0x1a6   : > { %1625 = vmatprep.subr.bf16.mxu0 %v2818_v24 }
 0x1a7   : > { %2562 = vmatpush3.bf16.msra.mxu1 %v2843_v44  ;;  %v2869_v44 = vld [vmem:[#allocation14 + $0x8] sm:$0xff]  }
 0x1a8   : > { %1092 = vmatprep.subr.bf16.mxu1 %v3489_v0 }
 0x1a9   : > { %1626 = vmatpush1.bf16.msra.mxu0 %v2816_v25 }
 0x1aa   : > { %1627 = vmatprep.subr.bf16.mxu0 %v2822_v27  ;;  %v2844_v27 = vld [vmem:[#allocation19] ss:$8 sps:$4 sm:$0xff]  }
 0x1ad   : > { %1628 = vmatpush1.bf16.msra.mxu0 %v2820_v28 }
 0x1ae   : > { %1629 = vmatprep.subr.bf16.mxu0 %v2826_v30  ;;  %v2847_v30 = vld [vmem:[#allocation19 + $0x10] ss:$8 sps:$4 sm:$0xff]  }
 0x1b1   : > { %1630 = vmatpush1.bf16.msra.mxu0 %v2824_v31  ;;  %v2852_v31 = vld [vmem:[#allocation19 + $0x24] ss:$8 sps:$4 sm:$0xff]  }
 0x1b2   : > { %1631 = vmatprep.subr.bf16.mxu0 %v2830_v33  ;;  %v2855_v33 = vld [vmem:[#allocation19 + $0x34] ss:$8 sps:$4 sm:$0xff]  }
 0x1b5   : > { %1632 = vmatpush1.bf16.msra.mxu0 %v2828_v34  ;;  %v2853_v34 = vld [vmem:[#allocation19 + $0x30] ss:$8 sps:$4 sm:$0xff]  }
 0x1b6   : > { %1633 = vmatprep.subr.bf16.mxu0 %v2834_v36  ;;  %v2856_v36 = vld [vmem:[#allocation19 + $0x40] ss:$8 sps:$4 sm:$0xff]  }
 0x1b9   : > { %1634 = vmatpush1.bf16.msra.mxu0 %v2832_v37  ;;  %v2861_v37 = vld [vmem:[#allocation19 + $0x54] ss:$8 sps:$4 sm:$0xff]  }
 0x1ba   : > { %1635 = vmatprep.subr.bf16.mxu0 %v2838_v39  ;;  %v2864_v39 = vld [vmem:[#allocation19 + $0x64] ss:$8 sps:$4 sm:$0xff]  }
 0x1bd   : > { %1636 = vmatpush1.bf16.msra.mxu0 %v2836_v40  ;;  %v2862_v40 = vld [vmem:[#allocation19 + $0x60] ss:$8 sps:$4 sm:$0xff]  }
 0x1be   : > { %1637 = vmatprep.subr.bf16.mxu0 %v2842_v42  ;;  %v2865_v42 = vld [vmem:[#allocation19 + $0x70] ss:$8 sps:$4 sm:$0xff]  }
 0x1c1   : > { %1638 = vmatpush1.bf16.msra.mxu0 %v2840_v43  ;;  %v2868_v43 = vld [vmem:[#allocation14] sm:$0xff]  }
 0x1c2   : > { %1746 = vmatprep.subr.bf16.mxu0 %v2846_v45  ;;  %v2870_v45 = vld [vmem:[#allocation14 + $0x10] sm:$0xff]  }
 0x277   : > { %v759_v55 = vpop.f32.mrb[0].mxu0 }
 0x278   : > { %v781_v57 = vmul.f32 %v774_v52, %v759_v55  ;;  %v761_v58 = vpop.f32.mrb[1].mxu0  ;;  %v2878_v55 = vld [vmem:[#allocation14 + $0x50] sm:$0xff]  }
 0x279   : > { %v782_v59 = vmul.f32 %v778_v53, %v761_v58  ;;  %v763_v60 = vpop.f32.mrb[2].mxu0  ;;  %v2405_v58 = vld [vmem:[#allocation13] ss:$0 sm:$0xff] }
 0x27a   : > { %v796_v61 = vadd.f32 %v789_v54, %v781_v57  ;;  %v783_v62 = vmul.f32 %v774_v52, %v763_v60  ;;  %v765_v63 = vpop.f32.mrb[3].mxu0  ;;  %v2875_v52 = vld [vmem:[#allocation14 + $0x38] sm:$0xff]  }
 0x27b   : > { %v797_v1 = vadd.f32 %v793_v56, %v782_v59  ;;  %v784_v2 = vmul.f32 %v778_v53, %v765_v63  ;;  %v2876_v53 = vld [vmem:[#allocation14 + $0x40] sm:$0xff]  }
 0x27c   : > { %v2392_v3 = vmul.f32 -1.442695, %v796_v61  ;;  %v798_v4 = vadd.f32 %v789_v54, %v783_v62  ;;  %v2877_v54 = vld [vmem:[#allocation14 + $0x48] sm:$0xff]  }
 0x27d   : > { %v2393_v5 = vmul.f32 -1.442695, %v797_v1  ;;  %v799_v6 = vadd.f32 %v793_v56, %v784_v2  ;;  %v2404_v56 = vld [vmem:[#allocation11] ss:$0 sm:$0xff] }
 0x27e   : > { %2948 = vpow2.f32 %v2392_v3  ;;  %v2394_v7 = vmul.f32 -1.442695, %v798_v4 }
 0x27f   : > { %2950 = vpow2.f32 %v2393_v5  ;;  %v2395_v8 = vmul.f32 -1.442695, %v799_v6 }
 0x280   : > { %2952 = vpow2.f32 %v2394_v7 }
 0x281   : > { %2954 = vpow2.f32 %v2395_v8 }
 0x288   : > { %v2949_v9 = vpop.eup %2948 }
 0x289   : > { %v2951_v10 = vpop.eup %2950  ;;  %v812_v11 = vadd.f32 1.0, %v2949_v9  ;;  %v2879_v9 = vld [vmem:[#allocation14 + $0x58] sm:$0xff]  }
 0x28a   : > { %v2953_v12 = vpop.eup %2952  ;;  %v813_v13 = vadd.f32 1.0, %v2951_v10 }
 0x28b   : > { %v2955_v14 = vpop.eup %2954  ;;  %2956 = vrcp.f32 %v812_v11  ;;  %v814_v15 = vadd.f32 1.0, %v2953_v12 }
 0x28c   : > { %2958 = vrcp.f32 %v813_v13  ;;  %v815_v16 = vadd.f32 1.0, %v2955_v14 }
 0x28d   : > { %2960 = vrcp.f32 %v814_v15 }
 0x28e   : > { %2962 = vrcp.f32 %v815_v16 }
 0x295   : > { %v2957_v17 = vpop.eup %2956 }
 0x296   : > { %v2959_v18 = vpop.eup %2958  ;;  %v824_v21 = vmul.f32 %v2957_v17, %v796_v61 }
 0x297   : > { %v2961_v19 = vpop.eup %2960  ;;  %v4013_v24 = vmul.f32 %v2959_v18, %v797_v1 }
 0x298   : > { %v2963_v20 = vpop.eup %2962  ;;  %v826_v22 = vmul.f32 %v2961_v19, %v798_v4 }
 0x299   : > { %v4015_v25 = vmul.f32 %v2963_v20, %v799_v6 }
 0x29a   : > { %v1509_v26 = vpack.c.bf16 %v826_v22, %v824_v21 }
 0x29b   : > { %v828_v28 = vpack.c.bf16 %v4015_v25, %v4013_v24 }
 0x29d   : > { %2564 = vmatmul.mubr.bf16.vlgmr.msra.gmra.mrb[0].mxu1 %v828_v28  ;;  %1656 = vmatmul.mubr.bf16.vlgmr.msra.gmra.mrb[4].mxu0 %v828_v28 }
 0x29e   : > { %1747 = vmatpush1.bf16.msra.mxu0 %v2844_v27  ;;  %1778 = vmatprep.mubr.bf16.mxu0 %v3489_v0 }
 0x29f   : > { %1748 = vmatprep.subr.bf16.mxu0 %v2849_v29  ;;  %1093 = vmatpush1.bf16.msra.mxu1 %v2868_v43  ;;  %v2892_v43 = vld [vmem:[#allocation19 + $0x130] ss:$8 sps:$4 sm:$0xff]  }
 0x2a0   : > { %1094 = vmatprep.subr.bf16.mxu1 %v3489_v0 }
 0x2a2   : > { %1749 = vmatpush1.bf16.msra.mxu0 %v2847_v30 }
 0x2a3   : > { %1750 = vmatprep.subr.bf16.mxu0 %v2852_v31  ;;  %1095 = vmatpush1.bf16.msra.mxu1 %v2869_v44  ;;  %v2895_v44 = vld [vmem:[#allocation10 + $0x58] sm:$0xff]  }
 0x2a4   : > { %1096 = vmatprep.subr.bf16.mxu1 %v3489_v0 }
 0x2a6   : > { %1751 = vmatpush1.bf16.msra.mxu0 %v2850_v32 }
 0x2a7   : > { %1752 = vmatprep.subr.bf16.mxu0 %v2855_v33  ;;  %1097 = vmatpush1.bf16.msra.mxu1 %v2870_v45  ;;  %v2882_v33 = vld [vmem:[#allocation19 + $0x104] ss:$8 sps:$4 sm:$0xff]  }
 0x2a8   : > { %1098 = vmatprep.subr.bf16.mxu1 %v3489_v0  ;;  %v2898_v45 = vld [vmem:[#allocation19 + $0x144] ss:$8 sps:$4 sm:$0xff]  }
 0x2aa   : > { %1753 = vmatpush1.bf16.msra.mxu0 %v2853_v34  ;;  %v2880_v34 = vld [vmem:[#allocation19 + $0x100] ss:$8 sps:$4 sm:$0xff]  }
 0x2ab   : > { %1754 = vmatprep.subr.bf16.mxu0 %v2858_v35  ;;  %1099 = vmatpush1.bf16.msra.mxu1 %v2871_v46  ;;  %v2883_v35 = vld [vmem:[#allocation10 + $0x40] sm:$0xff]   ;;  %v2896_v46 = vld [vmem:[#allocation19 + $0x140] ss:$8 sps:$4 sm:$0xff]  }
 0x2ac   : > { %1100 = vmatprep.subr.bf16.mxu1 %v3489_v0 }
 0x2ae   : > { %1755 = vmatpush1.bf16.msra.mxu0 %v2856_v36  ;;  %v2886_v36 = vld [vmem:[#allocation19 + $0x114] ss:$8 sps:$4 sm:$0xff]  }
 0x2af   : > { %1756 = vmatprep.subr.bf16.mxu0 %v2861_v37  ;;  %1101 = vmatpush1.bf16.msra.mxu1 %v2872_v47  ;;  %v2884_v37 = vld [vmem:[#allocation19 + $0x110] ss:$8 sps:$4 sm:$0xff]  }
 0x2b0   : > { %1102 = vmatprep.subr.bf16.mxu1 %v3489_v0  ;;  %v2899_v47 = vld [vmem:[#allocation10 + $0x60] sm:$0xff]  }
 0x2b2   : > { %1757 = vmatpush1.bf16.msra.mxu0 %v2859_v38  ;;  %v2887_v38 = vld [vmem:[#allocation10 + $0x48] sm:$0xff]  }
 0x2b3   : > { %1758 = vmatprep.subr.bf16.mxu0 %v2864_v39  ;;  %1103 = vmatpush1.bf16.msra.mxu1 %v2873_v49  ;;  %v2890_v39 = vld [vmem:[#allocation19 + $0x124] ss:$8 sps:$4 sm:$0xff]   ;;  %v2902_v49 = vld [vmem:[#allocation19 + $0x154] ss:$8 sps:$4 sm:$0xff]  }
 0x2b4   : > { %1104 = vmatprep.subr.bf16.mxu1 %v3489_v0 }
 0x2b6   : > { %1759 = vmatpush1.bf16.msra.mxu0 %v2862_v40  ;;  %v2888_v40 = vld [vmem:[#allocation19 + $0x120] ss:$8 sps:$4 sm:$0xff]  }
 0x2b7   : > { %1760 = vmatprep.subr.bf16.mxu0 %v2867_v41  ;;  %1105 = vmatpush1.bf16.msra.mxu1 %v2874_v51  ;;  %v2891_v41 = vld [vmem:[#allocation10 + $0x50] sm:$0xff]   ;;  %v2900_v51 = vld [vmem:[#allocation19 + $0x150] ss:$8 sps:$4 sm:$0xff]  }
 0x2b8   : > { %1106 = vmatprep.subr.bf16.mxu1 %v3489_v0 }
 0x2ba   : > { %1761 = vmatpush1.bf16.msra.mxu0 %v2865_v42  ;;  %v2894_v42 = vld [vmem:[#allocation19 + $0x134] ss:$8 sps:$4 sm:$0xff]  }
 0x2bb   : > { %1107 = vmatpush1.bf16.msra.mxu1 %v2875_v52  ;;  %1886 = vmatprep.subr.bf16.mxu0 %v2882_v33  ;;  %v2903_v52 = vld [vmem:[#allocation10 + $0x68] sm:$0xff]  }
 0x2bc   : > { %1108 = vmatprep.subr.bf16.mxu1 %v3489_v0 }
 0x2bd   : > { %1779 = vmatmul.mubr.bf16.vlgmr.msra.gmra.mrb[4].mxu0 %v1509_v26 }
 0x2be   : > { %1918 = vmatprep.mubr.bf16.mxu0 %v3489_v0  ;;  %1887 = vmatpush1.bf16.msra.mxu0 %v2880_v34 }
 0x2bf   : > { %1109 = vmatpush1.bf16.msra.mxu1 %v2876_v53  ;;  %1888 = vmatprep.subr.bf16.mxu0 %v2886_v36  ;;  %v2906_v53 = vld [vmem:[#allocation19 + $0x164] ss:$8 sps:$4 sm:$0xff]  }
 0x2c0   : > { %1110 = vmatprep.subr.bf16.mxu1 %v3489_v0 }
 0x2c2   : > { %1889 = vmatpush1.bf16.msra.mxu0 %v2884_v37 }
 0x2c3   : > { %1111 = vmatpush1.bf16.msra.mxu1 %v2877_v54  ;;  %1890 = vmatprep.subr.bf16.mxu0 %v2890_v39  ;;  %v2904_v54 = vld [vmem:[#allocation19 + $0x160] ss:$8 sps:$4 sm:$0xff]  }
 0x2c4   : > { %1112 = vmatprep.subr.bf16.mxu1 %v3489_v0 }
 0x2c6   : > { %1891 = vmatpush1.bf16.msra.mxu0 %v2888_v40 }
 0x2c7   : > { %1113 = vmatpush1.bf16.msra.mxu1 %v2878_v55  ;;  %1892 = vmatprep.subr.bf16.mxu0 %v2894_v42  ;;  %v2907_v55 = vld [vmem:[#allocation10 + $0x70] sm:$0xff]  }
 0x2c8   : > { %1114 = vmatprep.subr.bf16.mxu1 %v3489_v0 }
 0x2ca   : > { %1893 = vmatpush1.bf16.msra.mxu0 %v2892_v43 }
 0x2cb   : > { %1115 = vmatpush1.bf16.msra.mxu1 %v2879_v9  ;;  %1894 = vmatprep.subr.bf16.mxu0 %v2898_v45 }
 0x2cc   : > { %2567 = vmatprep.subr.bf16.mxu1 %v3490_v23 }
 0x2ce   : > { %1895 = vmatpush1.bf16.msra.mxu0 %v2896_v46 }
 0x2cf   : > { %1896 = vmatprep.subr.bf16.mxu0 %v2902_v49 }
 0x2d2   : > { %1897 = vmatpush1.bf16.msra.mxu0 %v2900_v51 }
 0x2d3   : > { %1898 = vmatprep.subr.bf16.mxu0 %v2906_v53 }
 0x2d6   : > { %1899 = vmatpush1.bf16.msra.mxu0 %v2904_v54 }
 0x370   : > { %v927_v57 = vpop.f32.mrb[0].mxu1 }
 0x371   : > { %v942_v59 = vmul.f32 %v2404_v56, %v927_v57  ;;  %v2565_v60 = vpop.f32.mrb[1].mxu1  ;;  %v2908_v57 = vld [vmem:[#allocation19 + $0x170] ss:$8 sps:$4 sm:$0xff]  }
 0x372   : > { %v930_v61 = vpop.f32.mrb[2].mxu1 }
 0x373   : > { %v950_v62 = vadd.f32 %v2405_v58, %v942_v59  ;;  %v943_v63 = vmul.f32 %v2404_v56, %v930_v61  ;;  %v2566_v1 = vpop.f32.mrb[3].mxu1  ;;  %v2910_v56 = vld [vmem:[#allocation19 + $0x174] ss:$8 sps:$4 sm:$0xff]  }
 0x374   : > { %1900 = vmatprep.subr.bf16.mxu0 %v2910_v56  ;;  %v2421_v59 = vld [vmem:[#allocation16] ss:$0 sm:$0xff]  ;;  %v2422_v61 = vld [vmem:[#allocation17] ss:$0 sm:$0xff] }
 0x375   : > { %v2406_v2 = vmul.f32 -1.442695, %v950_v62  ;;  %v951_v3 = vadd.f32 %v2405_v58, %v943_v63  ;;  %v2911_v58 = vld [vmem:[#allocation10 + $0x78] sm:$0xff]   ;;  %1901 = vmatpush1.bf16.msra.mxu0 %v2908_v57 }
 0x377   : > { %2964 = vpow2.f32 %v2406_v2  ;;  %v2407_v4 = vmul.f32 -1.442695, %v951_v3 }
 0x379   : > { %2966 = vpow2.f32 %v2407_v4 }
 0x381   : > { %v2965_v5 = vpop.eup %2964 }
 0x382   : > { %v958_v6 = vadd.f32 1.0, %v2965_v5 }
 0x383   : > { %v2967_v7 = vpop.eup %2966 }
 0x384   : > { %2968 = vrcp.f32 %v958_v6  ;;  %v959_v8 = vadd.f32 1.0, %v2967_v7 }
 0x386   : > { %2970 = vrcp.f32 %v959_v8 }
 0x38e   : > { %v2969_v10 = vpop.eup %2968 }
 0x38f   : > { %v964_v11 = vmul.f32 %v2969_v10, %v950_v62 }
 0x390   : > { %v2971_v12 = vpop.eup %2970 }
 0x391   : > { %v965_v13 = vmul.f32 %v2971_v12, %v951_v3  ;;  %v969_v14 = vrot.slane %v964_v11, 7  ;;  %v976_v15 = vrot.slane %v964_v11, 1 }
 0x393   : > { %v970_v16 = vrot.slane %v965_v13, 7  ;;  %v977_v17 = vrot.slane %v965_v13, 1  ;;  %v2778_v18 = vpack.i.bf16 %v965_v13, %v964_v11  ;;  %v974_v29 = vsel %vm968_vm2, 0.0, %v969_v14 }
 0x395   : > { %2779 = vrot.lane.b32.xlu0 %v2778_v18, %s3492_s2  ;;  %v978_v19 = vsel %vm975_vm1, %v976_v15, %v977_v17  ;;  %v981_v20 = vsel %vm975_vm1, %v977_v17, 0.0  ;;  %v971_v21 = vsel %vm968_vm2, %v969_v14, %v970_v16  ;;  %v2912_v18 = vld [vmem:[#allocation14 + $0x60] sm:$0xff]  }
 0x396   : > { %v992_v22 = vpack.c.bf16 %v981_v20, %v978_v19  ;;  %v2913_v19 = vld [vmem:[#allocation14 + $0x68] sm:$0xff]   ;;  %v2914_v20 = vld [vmem:[#allocation14 + $0x70] sm:$0xff]  }
 0x398   : > { %2420 = vmatprep.mubr.msk.bf16.mxu1 %vm988_vm3, %v992_v22  ;;  %v2918_v22 = vld [vmem:[#allocation14 + $0x90] sm:$0xff]  }
 0x407   : > { %v2780_v26 = vpop.permute.xlu0 %2779 }
 0x408   : > { %v2782_v27 = vunpack.i.h.bf16 %v2780_v26  ;;  %v2781_v28 = vunpack.i.l.bf16 %v2780_v26  ;;  %v2919_v26 = vld [vmem:[#allocation14 + $0x98] sm:$0xff]  }
 0x40a   : > { %v989_v30 = vsel %vm988_vm3, %v974_v29, %v2781_v28  ;;  %v990_v31 = vsel %vm988_vm3, %v971_v21, %v2782_v27  ;;  %v2917_v21 = vld [vmem:[#allocation14 + $0x88] sm:$0xff]   ;;  %v2920_v27 = vld [vmem:[#allocation14 + $0xa0] sm:$0xff]   ;;  %v2922_v29 = vld [vmem:[#allocation14 + $0xb0] sm:$0xff]  }
 0x40b   : > { %v991_v32 = vpack.c.bf16 %v990_v31, %v989_v30  ;;  %v2921_v28 = vld [vmem:[#allocation14 + $0xa8] sm:$0xff]   ;;  %v2433_v30 = vld [vmem:[#allocation11 + $0x1] ss:$0 sm:$0xff] }
 0x40d   : > { %1125 = vmatmul.mubr.bf16.vlgmr.msra.gmra.mrb[4].mxu1 %v991_v32  ;;  %v2434_v32 = vld [vmem:[#allocation13 + $0x1] ss:$0 sm:$0xff] }
 0x40e   : > { %2583 = vmatprep.mubr.msk.bf16.mxu1 %vm3491_vm0, %v3490_v23  ;;  %2568 = vmatpush3.bf16.msra.mxu1 %v2883_v35 }
 0x40f   : > { %2569 = vmatprep.subr.bf16.mxu1 %v3490_v23 }
 0x412   : > { %2570 = vmatpush3.bf16.msra.mxu1 %v2887_v38 }
 0x413   : > { %2571 = vmatprep.subr.bf16.mxu1 %v3490_v23 }
 0x416   : > { %2572 = vmatpush3.bf16.msra.mxu1 %v2891_v41 }
 0x417   : > { %2573 = vmatprep.subr.bf16.mxu1 %v3490_v23 }
 0x41a   : > { %2574 = vmatpush3.bf16.msra.mxu1 %v2895_v44 }
 0x41b   : > { %2575 = vmatprep.subr.bf16.mxu1 %v3490_v23 }
 0x41e   : > { %2576 = vmatpush3.bf16.msra.mxu1 %v2899_v47 }
 0x41f   : > { %2577 = vmatprep.subr.bf16.mxu1 %v3490_v23 }
 0x422   : > { %2578 = vmatpush3.bf16.msra.mxu1 %v2903_v52 }
 0x423   : > { %2579 = vmatprep.subr.bf16.mxu1 %v3490_v23 }
 0x426   : > { %2580 = vmatpush3.bf16.msra.mxu1 %v2907_v55 }
 0x427   : > { %2581 = vmatprep.subr.bf16.mxu1 %v3490_v23 }
 0x42a   : > { %2582 = vmatpush3.bf16.msra.mxu1 %v2911_v58 }
 0x42b   : > { %1432 = vmatprep.subr.bf16.mxu1 %v3489_v0 }
 0x4e0   : > { %v1126_v60 = vpop.f32.mrb[4].mxu1 }
 0x4e1   : > { %v1141_v62 = vmul.f32 %v2421_v59, %v1126_v60  ;;  %v1128_v63 = vpop.f32.mrb[5].mxu1 }
 0x4e2   : > { %v1129_v1 = vpop.f32.mrb[6].mxu1 }
 0x4e3   : > { %v1149_v2 = vadd.f32 %v2422_v61, %v1141_v62  ;;  %v1142_v3 = vmul.f32 %v2421_v59, %v1129_v1  ;;  %v1131_v4 = vpop.f32.mrb[7].mxu1 }
 0x4e5   : > { %v2423_v5 = vmul.f32 -1.442695, %v1149_v2  ;;  %v1150_v6 = vadd.f32 %v2422_v61, %v1142_v3 }
 0x4e7   : > { %2972 = vpow2.f32 %v2423_v5  ;;  %v2424_v23 = vmul.f32 -1.442695, %v1150_v6  ;;  %v2926_v5 = vld [vmem:[#allocation19 + $0x184] ss:$8 sps:$4 sm:$0xff]  }
 0x4e8   : > { %2031 = vmatprep.subr.bf16.mxu0 %v2926_v5 }
 0x4e9   : > { %2974 = vpow2.f32 %v2424_v23  ;;  %v2929_v23 = vld [vmem:[#allocation19 + $0x194] ss:$8 sps:$4 sm:$0xff]  }
 0x4f1   : > { %v2973_v7 = vpop.eup %2972 }
 0x4f2   : > { %v1157_v8 = vadd.f32 1.0, %v2973_v7  ;;  %v2927_v7 = vld [vmem:[#allocation19 + $0x190] ss:$8 sps:$4 sm:$0xff]  }
 0x4f3   : > { %v2975_v9 = vpop.eup %2974 }
 0x4f4   : > { %2976 = vrcp.f32 %v1157_v8  ;;  %v1158_v10 = vadd.f32 1.0, %v2975_v9  ;;  %v2932_v8 = vld [vmem:[#allocation19 + $0x1a4] ss:$8 sps:$4 sm:$0xff]   ;;  %v2930_v9 = vld [vmem:[#allocation19 + $0x1a0] ss:$8 sps:$4 sm:$0xff]  }
 0x4f6   : > { %2978 = vrcp.f32 %v1158_v10  ;;  %v2935_v10 = vld [vmem:[#allocation19 + $0x1b4] ss:$8 sps:$4 sm:$0xff]  }
 0x4fe   : > { %v2977_v11 = vpop.eup %2976 }
 0x4ff   : > { %v1163_v12 = vmul.f32 %v2977_v11, %v1149_v2  ;;  %v2933_v11 = vld [vmem:[#allocation19 + $0x1b0] ss:$8 sps:$4 sm:$0xff]  }
 0x500   : > { %v2979_v13 = vpop.eup %2978 }
 0x501   : > { %v1164_v14 = vmul.f32 %v2979_v13, %v1150_v6  ;;  %v4052_v15 = vadd.f32 %v1163_v12, %v4013_v24  ;;  %v2915_v24 = vld [vmem:[#allocation14 + $0x78] sm:$0xff]   ;;  %v2924_v6 = vld [vmem:[#allocation19 + $0x180] ss:$8 sps:$4 sm:$0xff]   ;;  %v2938_v12 = vld [vmem:[#allocation19 + $0x1c4] ss:$8 sps:$4 sm:$0xff]  }
 0x502   : > { %v2936_v13 = vld [vmem:[#allocation19 + $0x1c0] ss:$8 sps:$4 sm:$0xff]  }
 0x503   : > { %v4055_v16 = vadd.f32 %v1164_v14, %v4015_v25  ;;  %v2916_v25 = vld [vmem:[#allocation14 + $0x80] sm:$0xff]  }
 0x504   : > { %v2941_v14 = vld [vmem:[#allocation19 + $0x1d4] ss:$8 sps:$4 sm:$0xff]  }
 0x505   : > { %v1167_v17 = vpack.c.bf16 %v4055_v16, %v4052_v15 }
 0x507   : > { %2584 = vmatmul.mubr.bf16.vlgmr.msra.gmra.mrb[8].mxu1 %v1167_v17  ;;  %1919 = vmatmul.mubr.bf16.vlgmr.msra.gmra.mrb[4].mxu0 %v1167_v17  ;;  %v2939_v17 = vld [vmem:[#allocation19 + $0x1d0] ss:$8 sps:$4 sm:$0xff]  }
 0x508   : > { %2063 = vmatprep.mubr.bf16.mxu0 %v3489_v0  ;;  %1433 = vmatpush1.bf16.msra.mxu1 %v2912_v18  ;;  %v2944_v18 = vld [vmem:[#allocation19 + $0x1e4] ss:$8 sps:$4 sm:$0xff]  }
 0x509   : > { %1434 = vmatprep.subr.bf16.mxu1 %v3489_v0  ;;  %2032 = vmatpush1.bf16.msra.mxu0 %v2924_v6 }
 0x50a   : > { %2033 = vmatprep.subr.bf16.mxu0 %v2929_v23 }
 0x50c   : > { %1435 = vmatpush1.bf16.msra.mxu1 %v2913_v19  ;;  %v2942_v19 = vld [vmem:[#allocation19 + $0x1e0] ss:$8 sps:$4 sm:$0xff]  }
 0x50d   : > { %1436 = vmatprep.subr.bf16.mxu1 %v3489_v0  ;;  %2034 = vmatpush1.bf16.msra.mxu0 %v2927_v7 }
 0x50e   : > { %2035 = vmatprep.subr.bf16.mxu0 %v2932_v8 }
 0x510   : > { %1437 = vmatpush1.bf16.msra.mxu1 %v2914_v20  ;;  %v2947_v20 = vld [vmem:[#allocation19 + $0x1f4] ss:$8 sps:$4 sm:$0xff]  }
 0x511   : > { %1438 = vmatprep.subr.bf16.mxu1 %v3489_v0  ;;  %2036 = vmatpush1.bf16.msra.mxu0 %v2930_v9 }
 0x512   : > { %2037 = vmatprep.subr.bf16.mxu0 %v2935_v10 }
 0x514   : > { %1439 = vmatpush1.bf16.msra.mxu1 %v2915_v24  ;;  %v2945_v24 = vld [vmem:[#allocation19 + $0x1f0] ss:$8 sps:$4 sm:$0xff]  }
 0x515   : > { %1440 = vmatprep.subr.bf16.mxu1 %v3489_v0  ;;  %2038 = vmatpush1.bf16.msra.mxu0 %v2933_v11 }
 0x516   : > { %2039 = vmatprep.subr.bf16.mxu0 %v2938_v12 }
 0x518   : > { %1441 = vmatpush1.bf16.msra.mxu1 %v2916_v25  ;;  %v2450_v25 = vld [vmem:[#allocation16 + $0x1] ss:$0 sm:$0xff] }
 0x519   : > { %1442 = vmatprep.subr.bf16.mxu1 %v3489_v0  ;;  %2040 = vmatpush1.bf16.msra.mxu0 %v2936_v13 }
 0x51a   : > { %2041 = vmatprep.subr.bf16.mxu0 %v2941_v14 }
 0x51c   : > { %1443 = vmatpush1.bf16.msra.mxu1 %v2917_v21 }
 0x51d   : > { %1444 = vmatprep.subr.bf16.mxu1 %v3489_v0  ;;  %2042 = vmatpush1.bf16.msra.mxu0 %v2939_v17 }
 0x51e   : > { %2043 = vmatprep.subr.bf16.mxu0 %v2944_v18 }
 0x520   : > { %1445 = vmatpush1.bf16.msra.mxu1 %v2918_v22  ;;  %v2451_v22 = vld [vmem:[#allocation17 + $0x1] ss:$0 sm:$0xff] }
 0x521   : > { %1446 = vmatprep.subr.bf16.mxu1 %v3489_v0  ;;  %2044 = vmatpush1.bf16.msra.mxu0 %v2942_v19 }
 0x522   : > { %2045 = vmatprep.subr.bf16.mxu0 %v2947_v20 }
 0x524   : > { %1447 = vmatpush1.bf16.msra.mxu1 %v2919_v26 }
 0x525   : > { %1448 = vmatprep.subr.bf16.mxu1 %v3489_v0  ;;  %2046 = vmatpush1.bf16.msra.mxu0 %v2945_v24 }
 0x528   : > { %1449 = vmatpush1.bf16.msra.mxu1 %v2920_v27 }
 0x529   : > { %1450 = vmatprep.subr.bf16.mxu1 %v3489_v0 }
 0x52c   : > { %1451 = vmatpush1.bf16.msra.mxu1 %v2921_v28 }
 0x52d   : > { %1452 = vmatprep.subr.bf16.mxu1 %v3489_v0 }
 0x530   : > { %1453 = vmatpush1.bf16.msra.mxu1 %v2922_v29 }
 0x531   : > { %1454 = vmatprep.subr.bf16.mxu1 %v3489_v0  ;;  %v2923_v0 = vld [vmem:[#allocation14 + $0xb8] sm:$0xff]  }
 0x534   : > { %1455 = vmatpush1.bf16.msra.mxu1 %v2923_v0  ;;  %v2078_v0 = vld [vmem:[#allocation20] sm:$0x3] }
 0x5da   : > { %v1267_v31 = vpop.f32.mrb[8].mxu1 }
 0x5db   : > { %v1284_v33 = vmul.f32 %v2433_v30, %v1267_v31  ;;  %v2585_v34 = vpop.f32.mrb[9].mxu1 }
 0x5dc   : > { %v1270_v35 = vpop.f32.mrb[10].mxu1 }
 0x5dd   : > { %v1292_v36 = vadd.f32 %v2434_v32, %v1284_v33  ;;  %v1285_v37 = vmul.f32 %v2433_v30, %v1270_v35  ;;  %v2586_v38 = vpop.f32.mrb[11].mxu1 }
 0x5df   : > { %v2435_v39 = vmul.f32 -1.442695, %v1292_v36  ;;  %v1293_v40 = vadd.f32 %v2434_v32, %v1285_v37 }
 0x5e1   : > { %2980 = vpow2.f32 %v2435_v39  ;;  %v2436_v41 = vmul.f32 -1.442695, %v1293_v40 }
 0x5e3   : > { %2982 = vpow2.f32 %v2436_v41 }
 0x5eb   : > { %v2981_v42 = vpop.eup %2980 }
 0x5ec   : > { %v1300_v43 = vadd.f32 1.0, %v2981_v42 }
 0x5ed   : > { %v2983_v44 = vpop.eup %2982 }
 0x5ee   : > { %2984 = vrcp.f32 %v1300_v43  ;;  %v1301_v45 = vadd.f32 1.0, %v2983_v44 }
 0x5f0   : > { %2986 = vrcp.f32 %v1301_v45 }
 0x5f8   : > { %v2985_v46 = vpop.eup %2984 }
 0x5f9   : > { %v1306_v47 = vmul.f32 %v2985_v46, %v1292_v36  ;;  %v2079_v46 = vld [vmem:[#allocation22] sm:$0x3] }
 0x5fa   : > { %v2987_v49 = vpop.eup %2986 }
 0x5fb   : > { %v1307_v51 = vmul.f32 %v2987_v49, %v1293_v40  ;;  %v1310_v52 = vrot.slane %v1306_v47, 7  ;;  %v1316_v53 = vrot.slane %v1306_v47, 1  ;;  %v2088_v49 = vrot.slane %v2078_v0, %v4007_v50 }
 0x5fd   : > { %v1311_v54 = vrot.slane %v1307_v51, 7  ;;  %v1317_v55 = vrot.slane %v1307_v51, 1  ;;  %v2783_v56 = vpack.i.bf16 %v1307_v51, %v1306_v47  ;;  %v1315_v1 = vsel %vm968_vm2, 0.0, %v1310_v52 }
 0x5fe   : > { %v2084_v47 = vrot.slane %v2078_v0, %v4005_v48  ;;  %v2099_v51 = vrot.slane %v2079_v46, %v4005_v48 }
 0x5ff   : > { %2784 = vrot.lane.b32.xlu0 %v2783_v56, %s3492_s2  ;;  %v1318_v57 = vsel %vm975_vm1, %v1316_v53, %v1317_v55  ;;  %v1321_v58 = vsel %vm975_vm1, %v1317_v55, 0.0  ;;  %v1312_v59 = vsel %vm968_vm2, %v1310_v52, %v1311_v54  ;;  %v2103_v53 = vrot.slane %v2079_v46, %v4007_v50  ;;  %s3382_s2 = sshll.u32 %s3493_s3, 4  ;;  %s3383_s2 = int_to_ptr.vmem [resolvable:$false] %s3382_s2 }
 0x600   : > { %v1331_v60 = vpack.c.bf16 %v1321_v58, %v1318_v57  ;;  %s3384_s30 = scalar_lea.vmem %s3383_s2, 1024  ;;  %p3385_p11 = scmp.lt.s32.totalorder %s4087_s13, %s3383_s2 }
 0x601   : > { %p3386_p3 = scmp.lt.s32.totalorder %s3384_s30, %s3378_s20 }
 0x602   : > { %2449 = vmatprep.mubr.msk.bf16.mxu1 %vm988_vm3, %v1331_v60 }
 0x603   : > { %p3387_p5 = por %p3386_p3, %p3385_p11 }
 0x605   : > { %p3388_p7 = pnand %p3387_p5, %p3381_p10 }
 0x671   : > { %v2785_v61 = vpop.permute.xlu0 %2784 }
 0x672   : > { %v2787_v62 = vunpack.i.h.bf16 %v2785_v61  ;;  %v2786_v63 = vunpack.i.l.bf16 %v2785_v61 }
 0x674   : > { %v1328_v2 = vsel %vm988_vm3, %v1315_v1, %v2786_v63  ;;  %v1329_v3 = vsel %vm988_vm3, %v1312_v59, %v2787_v62 }
 0x675   : > { %v1330_v4 = vpack.c.bf16 %v1329_v3, %v1328_v2 }
 0x677   : > { %1465 = vmatmul.mubr.bf16.vlgmr.msra.gmra.mrb[12].mxu1 %v1330_v4 }
 0x74a   : > { %v1466_v21 = vpop.f32.mrb[12].mxu1 }
 0x74b   : > { %v1483_v26 = vmul.f32 %v2450_v25, %v1466_v21  ;;  %v1468_v27 = vpop.f32.mrb[13].mxu1 }
 0x74c   : > { %v1469_v28 = vpop.f32.mrb[14].mxu1 }
 0x74d   : > { %v1491_v29 = vadd.f32 %v2451_v22, %v1483_v26  ;;  %v1484_v30 = vmul.f32 %v2450_v25, %v1469_v28  ;;  %v1471_v31 = vpop.f32.mrb[15].mxu1 }
 0x74f   : > { %v2452_v32 = vmul.f32 -1.442695, %v1491_v29  ;;  %v1492_v33 = vadd.f32 %v2451_v22, %v1484_v30 }
 0x751   : > { %2988 = vpow2.f32 %v2452_v32  ;;  %v2453_v34 = vmul.f32 -1.442695, %v1492_v33 }
 0x753   : > { %2990 = vpow2.f32 %v2453_v34 }
 0x75b   : > { %v2989_v35 = vpop.eup %2988 }
 0x75c   : > { %v1499_v36 = vadd.f32 1.0, %v2989_v35 }
 0x75d   : > { %v2991_v37 = vpop.eup %2990 }
 0x75e   : > { %2992 = vrcp.f32 %v1499_v36  ;;  %v1500_v38 = vadd.f32 1.0, %v2991_v37 }
 0x760   : > { %2994 = vrcp.f32 %v1500_v38 }
 0x768   : > { %v2993_v39 = vpop.eup %2992 }
 0x769   : > { %v1505_v40 = vmul.f32 %v2993_v39, %v1491_v29 }
 0x76a   : > { %v2995_v41 = vpop.eup %2994 }
 0x76b   : > { %v1506_v42 = vmul.f32 %v2995_v41, %v1492_v33  ;;  %v1507_v43 = vadd.f32 %v1505_v40, %v4052_v15 }
 0x76d   : > { %v1508_v44 = vadd.f32 %v1506_v42, %v4055_v16 }
 0x76f   : > { %v1933_v45 = vpack.c.bf16 %v1508_v44, %v1507_v43 }
 0x771   : > { %2064 = vmatmul.mubr.bf16.vlgmr.msra.gmra.mrb[4].mxu0 %v1933_v45 }
 0x844   : > { %v2065_v52 = vpop.f32.mrb[4].mxu0 }
 0x845   : > { %v2091_v54 = vmul.f32 %v2084_v47, %v2065_v52  ;;  %v2067_v55 = vpop.f32.mrb[5].mxu0 }
 0x846   : > { %v2092_v56 = vmul.f32 %v2088_v49, %v2067_v55  ;;  %v2069_v57 = vpop.f32.mrb[6].mxu0 }
 0x847   : > { %v2106_v15 = vadd.f32 %v2099_v51, %v2091_v54  ;;  %v2093_v58 = vmul.f32 %v2084_v47, %v2069_v57  ;;  %v2071_v16 = vpop.f32.mrb[7].mxu0 }
 0x848   : > { %v2107_v59 = vadd.f32 %v2103_v53, %v2092_v56  ;;  %v2094_v60 = vmul.f32 %v2088_v49, %v2071_v16 }
 0x849   : > { %v2518_v61 = vmul.f32 -1.442695, %v2106_v15  ;;  %v2108_v62 = vadd.f32 %v2099_v51, %v2093_v58 }
 0x84a   : > { %v2519_v63 = vmul.f32 -1.442695, %v2107_v59  ;;  %v2109_v1 = vadd.f32 %v2103_v53, %v2094_v60 }
 0x84b   : > { %2996 = vpow2.f32 %v2518_v61  ;;  %v2520_v2 = vmul.f32 -1.442695, %v2108_v62 }
 0x84c   : > { %2998 = vpow2.f32 %v2519_v63  ;;  %v2521_v48 = vmul.f32 -1.442695, %v2109_v1 }
 0x84d   : > { %3000 = vpow2.f32 %v2520_v2 }
 0x84e   : > { %3002 = vpow2.f32 %v2521_v48 }
 0x855   : > { %v2997_v50 = vpop.eup %2996 }
 0x856   : > { %v2999_v3 = vpop.eup %2998  ;;  %v2122_v4 = vadd.f32 1.0, %v2997_v50 }
 0x857   : > { %v3001_v5 = vpop.eup %3000  ;;  %v2123_v6 = vadd.f32 1.0, %v2999_v3 }
 0x858   : > { %v3003_v23 = vpop.eup %3002  ;;  %3004 = vrcp.f32 %v2122_v4  ;;  %v2124_v7 = vadd.f32 1.0, %v3001_v5 }
 0x859   : > { %3006 = vrcp.f32 %v2123_v6  ;;  %v2125_v8 = vadd.f32 1.0, %v3003_v23 }
 0x85a   : > { %3008 = vrcp.f32 %v2124_v7 }
 0x85b   : > { %3010 = vrcp.f32 %v2125_v8 }
 0x862   : > { %v3005_v9 = vpop.eup %3004 }
 0x863   : > { %v3007_v10 = vpop.eup %3006  ;;  %v2134_v11 = vmul.f32 %v3005_v9, %v2106_v15 }
 0x864   : > { %v3009_v12 = vpop.eup %3008  ;;  %v2135_v13 = vmul.f32 %v3007_v10, %v2107_v59 }
 0x865   : > { %v3011_v14 = vpop.eup %3010  ;;  %2138 = vst [vmem:[%s624_s0] sm:$0xff] %v2134_v11  ;;  %v2136_v17 = vmul.f32 %v3009_v12, %v2108_v62 }
 0x866   : > { %2139 = vst [vmem:[%s624_s0 + $0x8] sm:$0xff] %v2135_v13  ;;  %v2137_v18 = vmul.f32 %v3011_v14, %v2109_v1 }
 0x867   : > { %2140 = vst [vmem:[%s624_s0 + $0x10] sm:$0xff] %v2136_v17 }
 0x868   : > { %2141 = vst [vmem:[%s624_s0 + $0x18] sm:$0xff] %v2137_v18 }
 0x869   : > { %3391 = shalt.err (!%p3388_p7)
}
 0x86a   : > { %s3392_s0 = scalar_lea.hbm %s4092_s1, 512  ;;  %s3396_s24 = scalar_lea.hbm %s4206_s23, 1024 }
 0x86b   : > { %p3393_p6 = scmp.ne.s32.totalorder %s4092_s1, %s3392_s0  ;;  %p3397_p1 = scmp.lt.u32.totalorder %s4092_s1, %s4206_s23 }
 0x86c   : > { %p3398_p13 = scmp.lt.u32.totalorder %s3396_s24, %s3392_s0  ;;  %p3400_p2 = scmp.lt.u32.totalorder %s3392_s0, %s4092_s1 }
 0x86d   : > { %p3394_p9 = pnand %p3393_p6, %p4207_p8 }
 0x86e   : > { %p3399_p0 = por %p3398_p13, %p3397_p1 }
 0x86f   : > { %p3395_p12 = pneg %p3394_p9 }
 0x870   : > { %p3401_p4 = por %p3400_p2, %p3399_p0 }
 0x872   : > { %p3402_p10 = pnand %p3401_p4, %p3395_p12 }
 0x874   : > { %3405 = shalt.err (!%p3402_p10)
}
 0x875   : > { %s3494_s20 = smov 256   ;;  %s3495_s2 = smov 16  }
 0x876   : > { %2649 = dma.vmem_to_hbm [thread:$0]  (%p4207_p8), %s4087_s13, 512, %s4092_s1, %s2143_s19, %s3494_s20, %s3494_s20, %s3495_s2  }
 0x877 PF: > { %s4208_s30 = sld [smem:[#allocation32_spill]]  ;;  %p4209_p11 = scmp.ne.s32.totalorder %s4187_s17, 0 }
 0x878   : > { %p4210_p3 = scmp.ge.s32.totalorder %s3468_s28, 2 }
 0x87a   : > { %p2693_p5 = pnand %p4210_p3, %p4209_p11 }
 0x87d   : > { %s2171_s14 = sand.u32 1, %s4208_s30  }
 0x87e   : > { %s2172_s0 = scalar_lea.sflag [#allocation4], %s2171_s14 }
 0x87f   : > { %3451 = dma.done.wait (!%p2693_p5), %s2172_s0, 512  }
 0x880   : > { %3453 = vsyncadd (!%p2693_p5), %s2172_s0, 4294966784  ;;  %p32_p7 = scmp.ge.s32.totalorder %s3874_s18, 4   ;;  %s4211_s25 = smov %s3460_s26 }
 0x881   : > { %s4212_s26 = smov %s3464_s27  ;;  %s4213_s27 = smov %s3885_s29 }
 0x882   : > { %s4214_s28 = smov %s3874_s18  ;;  %34 = sbr.rel (!%p32_p7) target bundleno = 17 (0x11), region = 174 }
 0x889   :  { %2177 = vsyncpa [#allocation3], 1 }
 0x88a   :  { %2179 = vsyncpa [#allocation3 + $0x1], 1 }
 0x88b   :  { %2180 = vsyncpa [#allocation6], 1 }
 0x88c   :  { %2181 = vsyncpa [#allocation9], 1 }
 0x88d   :  { %2182 = vsyncpa [#allocation12], 1 }
 0x88e   :  { %2183 = vsyncpa [#allocation15], 1 }
 0x88f   :  { %2184 = vsyncpa [#allocation18], 1 }
 0x890   :  { %2185 = vsyncpa [#allocation21], 1 }
 0x891   :  { %2186 = vsyncpa [#allocation4], 1 }
 0x892   :  { %2188 = vsyncpa [#allocation4 + $0x1], 1 }

</bundles_post_ra>
